<compile_context>
chip_gen: v7x
topology: tpu7x:2x2x1
jax: 0.10.0
libtpu: 0.0.40
codegen_flags: <defaults>
</compile_context>

<pallas_src>
import functools

import jax
import jax.numpy as jnp
from jax.experimental import pallas as pl
from jax.experimental.pallas import tpu as pltpu

EPS = 1e-5

# If the f32 x working set is at most this big, use the fully VMEM-resident fast path
# (whole working set ~4-5x this, comfortably inside every chip's default scoped VMEM).
_FAST_PATH_X_BYTES = 2 * 1024 * 1024


# --------------------------------------------------------------------------------------
# Kernels
# --------------------------------------------------------------------------------------
def _fused_small_kernel(x_ref, w1t_ref, g1_ref, b1_ref, w2t_ref, g2_ref, b2_ref,
                        o_ref, *, inv_n):
    """Single-invocation path: x, weights and all intermediates stay VMEM-resident."""
    x = x_ref[...]                                           # (N, C) f32, also residual
    # Linear1 (bias=False): bf16 MXU matmul, f32 accumulation.
    h1 = jnp.dot(x.astype(jnp.bfloat16), w1t_ref[...],
                 preferred_element_type=jnp.float32)
    m1 = jnp.sum(h1, axis=0, keepdims=True) * inv_n
    v1 = jnp.sum(h1 * h1, axis=0, keepdims=True) * inv_n - m1 * m1
    scale1 = g1_ref[...] * jax.lax.rsqrt(v1 + EPS)
    shift1 = b1_ref[...] - m1 * scale1
    a1 = jnp.maximum(h1 * scale1 + shift1, 0.0)              # BN1 + ReLU (f32)
    # Linear2 (bias=False).
    h2 = jnp.dot(a1.astype(jnp.bfloat16), w2t_ref[...],
                 preferred_element_type=jnp.float32)
    m2 = jnp.sum(h2, axis=0, keepdims=True) * inv_n
    v2 = jnp.sum(h2 * h2, axis=0, keepdims=True) * inv_n - m2 * m2
    scale2 = g2_ref[...] * jax.lax.rsqrt(v2 + EPS)
    shift2 = b2_ref[...] - m2 * scale2
    # BN2 + identity residual + ReLU.
    o_ref[...] = jnp.maximum(h2 * scale2 + shift2 + x, 0.0).astype(o_ref.dtype)


def _multipass_kernel(x_ref, w1t_ref, g1_ref, b1_ref, w2t_ref, g2_ref, b2_ref,
                      o_ref, s1_ref, q1_ref, s2_ref, q2_ref,
                      *, inv_n, n_real, tile_n, needs_mask):
    """Streaming path.  Grid = (pass, tile):
         pass 0: h1 = x @ W1^T                        -> accumulate sum/sumsq(h1)
         pass 1: recompute h1, BN1+ReLU, h2 = a1@W2^T -> accumulate sum/sumsq(h2)
         pass 2: recompute, apply BN1/BN2, add identity residual, ReLU, write output
       s*/q* scratch holds raw (sum, sumsq) during accumulation and is converted in
       place to the folded BN (scale, shift) at the first tile of the consuming pass.
    """
    p = pl.program_id(0)   # pass
    t = pl.program_id(1)   # tile index along N

    @pl.when(jnp.logical_and(p == 0, t == 0))
    def _():
        s1_ref[...] = jnp.zeros_like(s1_ref)
        q1_ref[...] = jnp.zeros_like(q1_ref)
        s2_ref[...] = jnp.zeros_like(s2_ref)
        q2_ref[...] = jnp.zeros_like(q2_ref)

    x = x_ref[...]                                            # (TN, C) f32, also residual
    h1 = jnp.dot(x.astype(jnp.bfloat16), w1t_ref[...],
                 preferred_element_type=jnp.float32)

    if needs_mask:
        # Last tile extends past N (cdiv grid): mask padded/garbage rows out of the
        # BN statistics.  inv_n stays 1/real_N.
        rows = jax.lax.broadcasted_iota(jnp.int32, (tile_n, h1.shape[1]), 0)
        row_mask = (t * tile_n + rows) < n_real
    else:
        row_mask = None

    @pl.when(p == 0)
    def _():
        h1s = jnp.where(row_mask, h1, 0.0) if needs_mask else h1
        s1_ref[...] += jnp.sum(h1s, axis=0, keepdims=True)
        q1_ref[...] += jnp.sum(h1s * h1s, axis=0, keepdims=True)

    # Hoisted BN1 fold: convert (sum, sumsq) -> (scale, shift) once, reuse scratch.
    @pl.when(jnp.logical_and(p == 1, t == 0))
    def _():
        m1 = s1_ref[...] * inv_n
        v1 = q1_ref[...] * inv_n - m1 * m1
        scale1 = g1_ref[...] * jax.lax.rsqrt(v1 + EPS)
        s1_ref[...] = scale1
        q1_ref[...] = b1_ref[...] - m1 * scale1

    @pl.when(p >= 1)
    def _():
        a1 = jnp.maximum(h1 * s1_ref[...] + q1_ref[...], 0.0)   # BN1 + ReLU
        h2 = jnp.dot(a1.astype(jnp.bfloat16), w2t_ref[...],
                     preferred_element_type=jnp.float32)

        @pl.when(p == 1)
        def _():
            h2s = jnp.where(row_mask, h2, 0.0) if needs_mask else h2
            s2_ref[...] += jnp.sum(h2s, axis=0, keepdims=True)
            q2_ref[...] += jnp.sum(h2s * h2s, axis=0, keepdims=True)

        # Hoisted BN2 fold at the first tile of the output pass.
        @pl.when(jnp.logical_and(p == 2, t == 0))
        def _():
            m2 = s2_ref[...] * inv_n
            v2 = q2_ref[...] * inv_n - m2 * m2
            scale2 = g2_ref[...] * jax.lax.rsqrt(v2 + EPS)
            s2_ref[...] = scale2
            q2_ref[...] = b2_ref[...] - m2 * scale2

        @pl.when(p == 2)
        def _():
            out = jnp.maximum(h2 * s2_ref[...] + q2_ref[...] + x, 0.0)
            o_ref[...] = out.astype(o_ref.dtype)


# --------------------------------------------------------------------------------------
# Wrappers
# --------------------------------------------------------------------------------------
def _pad_to(v, size, axis):
    pad = size - v.shape[axis]
    if pad == 0:
        return v
    widths = [(0, 0)] * v.ndim
    widths[axis] = (0, pad)
    return jnp.pad(v, widths)


def _call_fused_small(x, w1t, g1, b1, w2t, g2, b2, *, n, cp):
    kernel = functools.partial(_fused_small_kernel, inv_n=1.0 / n)
    flops = 2 * 2 * n * cp * cp + 12 * n * cp
    bytes_accessed = 2 * n * cp * 4 + 2 * cp * cp * 2 + 4 * cp * 4
    return pl.pallas_call(
        kernel,
        out_shape=jax.ShapeDtypeStruct((n, cp), x.dtype),
        cost_estimate=pl.CostEstimate(flops=flops, transcendentals=2 * cp,
                                      bytes_accessed=bytes_accessed),
    )(x, w1t, g1, b1, w2t, g2, b2)


def _call_multipass(x, w1t, g1, b1, w2t, g2, b2, *, n, cp, tile_n):
    if tile_n is None:
        # HBM-bound: >=512-1024 rows reaches ~85-86% of HBM roofline and amortizes the
        # ~0.35us/grid-step overhead + MXU fill.  Floor 256; 1024 is VMEM-safe on
        # v5e/v6e/v7x even at the default scoped limit for C=128.
        tile_n = 1024
    tile_n = min(tile_n, n)
    if tile_n < n:
        tile_n = min(max(256, (tile_n // 8) * 8), n)   # keep row tiles 8-aligned
    nt = pl.cdiv(n, tile_n)
    needs_mask = (n % tile_n) != 0

    kernel = functools.partial(_multipass_kernel, inv_n=1.0 / n, n_real=n,
                               tile_n=tile_n, needs_mask=needs_mask)

    # Weights / gamma / beta: block index never changes -> DMAed once, VMEM-resident.
    # (pl.Buffered(1) on these would drop the useless second buffer; only matters for
    #  large hidden sizes, so left at the default here.)
    resident = lambda shape: pl.BlockSpec(shape, lambda p, t: (0, 0))
    # x streamed per pass.  TODO(synk): if the surrounding GCN graph can hand over bf16
    # activations, stream a bf16 x for passes 0/1 to cut HBM traffic ~25%.
    x_spec = pl.BlockSpec((tile_n, cp), lambda p, t: (t, 0))
    # Output block index frozen at 0 during the statistics passes so never-written
    # buffers are never flushed to HBM.  This is safe because block 0 is fully written
    # at (p==2, t==0) *before* the first index change ever occurs.
    out_spec = pl.BlockSpec((tile_n, cp), lambda p, t: (jnp.where(p == 2, t, 0), 0))

    # 3 sweeps of Linear1 + 2 of Linear2 (stat passes recompute), plus BN/ReLU VPU work.
    flops = 5 * 2 * n * cp * cp + 12 * n * cp
    bytes_accessed = (3 * n * cp * 4        # x re-read once per pass (f32)
                      + n * cp * 4          # output (f32)
                      + 2 * cp * cp * 2     # bf16 weights (DMAed once)
                      + 4 * cp * 4)         # gamma / beta

    # Only raise the scoped-VMEM limit when the working set might not fit the smallest
    # default (v5e ~16 MiB); cap well under v7x's 64 MiB physical VMEM.
    tile_bytes = tile_n * cp * 4
    est_vmem = 9 * tile_bytes + 4 * cp * cp * 2 + 64 * cp * 4
    params = dict(dimension_semantics=("arbitrary", "arbitrary"))  # BN reductions carry
    if est_vmem > 12 * 2**20:
        params["vmem_limit_bytes"] = int(min(est_vmem + (8 << 20), 48 << 20))

    return pl.pallas_call(
        kernel,
        out_shape=jax.ShapeDtypeStruct((n, cp), x.dtype),
        grid=(3, nt),
        in_specs=[
            x_spec,                 # x tile (f32)
            resident((cp, cp)),     # W1^T (bf16)
            resident((1, cp)),      # gamma1
            resident((1, cp)),      # beta1
            resident((cp, cp)),     # W2^T (bf16)
            resident((1, cp)),      # gamma2
            resident((1, cp)),      # beta2
        ],
        out_specs=out_spec,
        scratch_shapes=[pltpu.VMEM((1, cp), jnp.float32) for _ in range(4)],
        compiler_params=pltpu.CompilerParams(**params),
        cost_estimate=pl.CostEstimate(flops=flops, transcendentals=4 * cp,
                                      bytes_accessed=bytes_accessed),
    )(x, w1t, g1, b1, w2t, g2, b2)


def residual_block(x, w1, gamma1, beta1, w2, gamma2, beta2, *,
                   tile_n=None, use_fast_path=None):
    """ResidualBlock forward (training-mode BN, identity shortcut).

    x: (N, C) float32.  w1: (C, C), w2: (C, C) in PyTorch (out, in) layout.
    """
    x = jnp.asarray(x, jnp.float32)
    n, c = x.shape
    w1 = jnp.asarray(w1, jnp.float32)
    w2 = jnp.asarray(w2, jnp.float32)
    assert w1.shape == (c, c) and w2.shape == (c, c), \
        "identity shortcut requires inchannel == outchannel"

    # Pad the feature dim to a multiple of 128: full-lane (unmasked) stores, clean
    # (8,128) tiling.  Zero-padded channels (gamma/beta pads = 0) stay exactly 0
    # through both BN stages and the residual, and are sliced off at the end.
    cp = ((c + 127) // 128) * 128
    if cp != c:
        x = _pad_to(x, cp, 1)
        w1 = _pad_to(_pad_to(w1, cp, 0), cp, 1)
        w2 = _pad_to(_pad_to(w2, cp, 0), cp, 1)

    def vec(v):
        return _pad_to(jnp.asarray(v, jnp.float32).reshape(1, c), cp, 1)

    g1, b1, g2, b2 = vec(gamma1), vec(beta1), vec(gamma2), vec(beta2)

    # Pre-transpose once so the kernels do a plain x @ W^T MXU matmul; weights are
    # bf16 (the MXU accumulates in f32 via preferred_element_type).
    w1t = w1.T.astype(jnp.bfloat16)
    w2t = w2.T.astype(jnp.bfloat16)

    if use_fast_path is None:
        use_fast_path = (n * cp * 4) <= _FAST_PATH_X_BYTES

    if use_fast_path:
        out = _call_fused_small(x, w1t, g1, b1, w2t, g2, b2, n=n, cp=cp)
    else:
        out = _call_multipass(x, w1t, g1, b1, w2t, g2, b2, n=n, cp=cp, tile_n=tile_n)

    return out[:, :c] if cp != c else out


# --------------------------------------------------------------------------------------
# Pure-JAX reference (PyTorch training-mode semantics)
# --------------------------------------------------------------------------------------
def residual_block_ref(x, w1, gamma1, beta1, w2, gamma2, beta2,
                       *, matmul_dtype=jnp.float32):
    """matmul_dtype=bfloat16 reproduces the kernel's MXU input rounding (tight check);
    matmul_dtype=float32 is the exact PyTorch-semantics reference."""
    def mm(a, bt):
        return jnp.dot(a.astype(matmul_dtype), bt.astype(matmul_dtype),
                       preferred_element_type=jnp.float32)

    h = mm(x, w1.T)
    m = h.mean(0, keepdims=True)
    v = ((h - m) ** 2).mean(0, keepdims=True)
    h = (h - m) / jnp.sqrt(v + EPS) * gamma1 + beta1
    h = jnp.maximum(h, 0.0)
    h2 = mm(h, w2.T)
    m2 = h2.mean(0, keepdims=True)
    v2 = ((h2 - m2) ** 2).mean(0, keepdims=True)
    h2 = (h2 - m2) / jnp.sqrt(v2 + EPS) * gamma2 + beta2
    return jnp.maximum(h2 + x, 0.0)


# --------------------------------------------------------------------------------------
# Self-test
# --------------------------------------------------------------------------------------
if __name__ == "__main__":
    key = jax.random.PRNGKey(0)

    def make_inputs(key, n, c):
        ks = jax.random.split(key, 7)
        x = jax.random.normal(ks[0], (n, c), dtype=jnp.float32)
        w1 = jax.random.normal(ks[1], (c, c), dtype=jnp.float32) * 0.05
        w2 = jax.random.normal(ks[2], (c, c), dtype=jnp.float32) * 0.05
        g1 = 1.0 + 0.1 * jax.random.normal(ks[3], (c,), dtype=jnp.float32)
        b1 = 0.1 * jax.random.normal(ks[4], (c,), dtype=jnp.float32)
        g2 = 1.0 + 0.1 * jax.random.normal(ks[5], (c,), dtype=jnp.float32)
        b2 = 0.1 * jax.random.normal(ks[6], (c,), dtype=jnp.float32)
        return x, w1, g1, b1, w2, g2, b2

    def run_and_check(name, args, **kwargs):
        x, w1, g1, b1, w2, g2, b2 = args
        out = residual_block(x, w1, g1, b1, w2, g2, b2, **kwargs)
        out = jax.block_until_ready(out)
        assert out.shape == x.shape and out.dtype == x.dtype, name
        # Tight check vs a reference with the same bf16 matmul rounding (f32 accumulate).
        ref_bf16 = residual_block_ref(x, w1, g1, b1, w2, g2, b2,
                                      matmul_dtype=jnp.bfloat16)
        assert jnp.allclose(out, ref_bf16, atol=5e-3, rtol=5e-3), \
            f"{name}: mismatch vs bf16-matmul reference"
        # Loose sanity check vs the full-f32 PyTorch-semantics reference.
        ref_f32 = residual_block_ref(x, w1, g1, b1, w2, g2, b2,
                                     matmul_dtype=jnp.float32)
        assert jnp.allclose(out, ref_f32, atol=1e-1, rtol=1e-1), \
            f"{name}: mismatch vs f32 reference"

    k1, k2, k3 = jax.random.split(key, 3)
    # 1) Small problem -> single-invocation fully-resident fast path.
    run_and_check("fast_path", make_inputs(k1, 512, 128))
    # 2) Streaming 3-pass path with a non-dividing N (cdiv grid + masked last tile).
    run_and_check("multipass", make_inputs(k2, 600, 128),
                  tile_n=256, use_fast_path=False)
    # 3) Feature dim not 128-aligned -> padded to 128 lanes, output sliced back.
    run_and_check("padded_c", make_inputs(k3, 256, 96))

    print("KERNEL_OK")
</pallas_src>

<mosaic_0001>
module attributes {stable_mosaic.version = 11 : i64} {
  func.func @_fused_small_kernel(%arg0: memref<512x128xf32, #tpu.memory_space<vmem>>, %arg1: memref<128x128xbf16, #tpu.memory_space<vmem>>, %arg2: memref<1x128xf32, #tpu.memory_space<vmem>>, %arg3: memref<1x128xf32, #tpu.memory_space<vmem>>, %arg4: memref<128x128xbf16, #tpu.memory_space<vmem>>, %arg5: memref<1x128xf32, #tpu.memory_space<vmem>>, %arg6: memref<1x128xf32, #tpu.memory_space<vmem>>, %arg7: memref<512x128xf32, #tpu.memory_space<vmem>>) attributes {dimension_semantics = [], scalar_prefetch = 0 : i64, scratch_operands = 0 : i64, tpu.core_type = #tpu.core_type<tc>} {
    %c0 = arith.constant 0 : index
    %c0_0 = arith.constant 0 : index
    %0 = vector.load %arg0[%c0, %c0_0] : memref<512x128xf32, #tpu.memory_space<vmem>>, vector<512x128xf32>
    %1 = arith.truncf %0 : vector<512x128xf32> to vector<512x128xbf16>
    %c0_1 = arith.constant 0 : index
    %c0_2 = arith.constant 0 : index
    %2 = vector.load %arg1[%c0_1, %c0_2] : memref<128x128xbf16, #tpu.memory_space<vmem>>, vector<128x128xbf16>
    %cst = arith.constant dense<0.000000e+00> : vector<512x128xf32>
    %3 = tpu.matmul %1, %2, %cst {dimension_numbers = #tpu.dot_dimension_numbers<[1], [0], [0], [1], [0, 0, 1, 1], [], []>} : vector<512x128xbf16>, vector<128x128xbf16>, vector<512x128xf32> -> vector<512x128xf32>
    %cst_3 = arith.constant dense<0.000000e+00> : vector<128xf32>
    %4 = vector.multi_reduction <add>, %3, %cst_3 [0] : vector<512x128xf32> to vector<128xf32>
    %5 = vector.shape_cast %4 : vector<128xf32> to vector<1x128xf32>
    %cst_4 = arith.constant 0.001953125 : f32
    %6 = vector.broadcast %cst_4 : f32 to vector<1x128xf32>
    %7 = arith.mulf %5, %6 : vector<1x128xf32>
    %8 = arith.mulf %3, %3 : vector<512x128xf32>
    %cst_5 = arith.constant dense<0.000000e+00> : vector<128xf32>
    %9 = vector.multi_reduction <add>, %8, %cst_5 [0] : vector<512x128xf32> to vector<128xf32>
    %10 = vector.shape_cast %9 : vector<128xf32> to vector<1x128xf32>
    %cst_6 = arith.constant 0.001953125 : f32
    %11 = vector.broadcast %cst_6 : f32 to vector<1x128xf32>
    %12 = arith.mulf %10, %11 : vector<1x128xf32>
    %13 = arith.mulf %7, %7 : vector<1x128xf32>
    %14 = arith.subf %12, %13 : vector<1x128xf32>
    %c0_7 = arith.constant 0 : index
    %c0_8 = arith.constant 0 : index
    %15 = vector.load %arg2[%c0_7, %c0_8] : memref<1x128xf32, #tpu.memory_space<vmem>>, vector<1x128xf32>
    %cst_9 = arith.constant 9.99999974E-6 : f32
    %16 = vector.broadcast %cst_9 : f32 to vector<1x128xf32>
    %17 = arith.addf %14, %16 : vector<1x128xf32>
    %18 = math.rsqrt %17 : vector<1x128xf32>
    %19 = arith.mulf %15, %18 : vector<1x128xf32>
    %c0_10 = arith.constant 0 : index
    %c0_11 = arith.constant 0 : index
    %20 = vector.load %arg3[%c0_10, %c0_11] : memref<1x128xf32, #tpu.memory_space<vmem>>, vector<1x128xf32>
    %21 = arith.mulf %7, %19 : vector<1x128xf32>
    %22 = arith.subf %20, %21 : vector<1x128xf32>
    %23 = vector.broadcast %19 : vector<1x128xf32> to vector<512x128xf32>
    %24 = arith.mulf %3, %23 : vector<512x128xf32>
    %25 = vector.broadcast %22 : vector<1x128xf32> to vector<512x128xf32>
    %26 = arith.addf %24, %25 : vector<512x128xf32>
    %cst_12 = arith.constant 0.000000e+00 : f32
    %27 = vector.broadcast %cst_12 : f32 to vector<512x128xf32>
    %28 = arith.maximumf %26, %27 : vector<512x128xf32>
    %29 = arith.truncf %28 : vector<512x128xf32> to vector<512x128xbf16>
    %c0_13 = arith.constant 0 : index
    %c0_14 = arith.constant 0 : index
    %30 = vector.load %arg4[%c0_13, %c0_14] : memref<128x128xbf16, #tpu.memory_space<vmem>>, vector<128x128xbf16>
    %cst_15 = arith.constant dense<0.000000e+00> : vector<512x128xf32>
    %31 = tpu.matmul %29, %30, %cst_15 {dimension_numbers = #tpu.dot_dimension_numbers<[1], [0], [0], [1], [0, 0, 1, 1], [], []>} : vector<512x128xbf16>, vector<128x128xbf16>, vector<512x128xf32> -> vector<512x128xf32>
    %cst_16 = arith.constant dense<0.000000e+00> : vector<128xf32>
    %32 = vector.multi_reduction <add>, %31, %cst_16 [0] : vector<512x128xf32> to vector<128xf32>
    %33 = vector.shape_cast %32 : vector<128xf32> to vector<1x128xf32>
    %cst_17 = arith.constant 0.001953125 : f32
    %34 = vector.broadcast %cst_17 : f32 to vector<1x128xf32>
    %35 = arith.mulf %33, %34 : vector<1x128xf32>
    %36 = arith.mulf %31, %31 : vector<512x128xf32>
    %cst_18 = arith.constant dense<0.000000e+00> : vector<128xf32>
    %37 = vector.multi_reduction <add>, %36, %cst_18 [0] : vector<512x128xf32> to vector<128xf32>
    %38 = vector.shape_cast %37 : vector<128xf32> to vector<1x128xf32>
    %cst_19 = arith.constant 0.001953125 : f32
    %39 = vector.broadcast %cst_19 : f32 to vector<1x128xf32>
    %40 = arith.mulf %38, %39 : vector<1x128xf32>
    %41 = arith.mulf %35, %35 : vector<1x128xf32>
    %42 = arith.subf %40, %41 : vector<1x128xf32>
    %c0_20 = arith.constant 0 : index
    %c0_21 = arith.constant 0 : index
    %43 = vector.load %arg5[%c0_20, %c0_21] : memref<1x128xf32, #tpu.memory_space<vmem>>, vector<1x128xf32>
    %cst_22 = arith.constant 9.99999974E-6 : f32
    %44 = vector.broadcast %cst_22 : f32 to vector<1x128xf32>
    %45 = arith.addf %42, %44 : vector<1x128xf32>
    %46 = math.rsqrt %45 : vector<1x128xf32>
    %47 = arith.mulf %43, %46 : vector<1x128xf32>
    %c0_23 = arith.constant 0 : index
    %c0_24 = arith.constant 0 : index
    %48 = vector.load %arg6[%c0_23, %c0_24] : memref<1x128xf32, #tpu.memory_space<vmem>>, vector<1x128xf32>
    %49 = arith.mulf %35, %47 : vector<1x128xf32>
    %50 = arith.subf %48, %49 : vector<1x128xf32>
    %51 = vector.broadcast %47 : vector<1x128xf32> to vector<512x128xf32>
    %52 = arith.mulf %31, %51 : vector<512x128xf32>
    %53 = vector.broadcast %50 : vector<1x128xf32> to vector<512x128xf32>
    %54 = arith.addf %52, %53 : vector<512x128xf32>
    %55 = arith.addf %54, %0 : vector<512x128xf32>
    %cst_25 = arith.constant 0.000000e+00 : f32
    %56 = vector.broadcast %cst_25 : f32 to vector<512x128xf32>
    %57 = arith.maximumf %55, %56 : vector<512x128xf32>
    %c0_26 = arith.constant 0 : index
    %c0_27 = arith.constant 0 : index
    %58 = vector.load %arg7[%c0_26, %c0_27] : memref<512x128xf32, #tpu.memory_space<vmem>>, vector<512x128xf32>
    tpu.vector_store %arg7[%c0_26, %c0_27], %57 {strides = array<i32>} : memref<512x128xf32, #tpu.memory_space<vmem>>, vector<512x128xf32>,
    return
  }
}

</mosaic_0001>

<bundles_post_ra>
// kernel: tpu_custom_call.1
= control target key start
LH: loop header
LB: loop body
LE: loop exit
PB: predicated region body
PF: predicated region fallthrough
CT: control target
= control target key end

     0   :  { %12 = vsyncpa [#allocation3], 0  ;;  %s4286_s0 = inlined_call_operand.hbm [shape: f32[512,128], index: 0, kind: input, shape index: {}]   ;;  %s4287_s1 = inlined_call_operand.hbm [shape: bf16[128,128], index: 1, kind: input, shape index: {}]   ;;  %s4288_s2 = inlined_call_operand.vmem [shape: f32[1,128], index: 2, kind: input, shape index: {}]   ;;  %s4289_s3 = inlined_call_operand.vmem [shape: f32[1,128], index: 3, kind: input, shape index: {}]   ;;  %s4290_s4 = inlined_call_operand.hbm [shape: bf16[128,128], index: 4, kind: input, shape index: {}]   ;;  %s4291_s5 = inlined_call_operand.vmem [shape: f32[1,128], index: 5, kind: input, shape index: {}]   ;;  %s4292_s6 = inlined_call_operand.vmem [shape: f32[1,128], index: 6, kind: input, shape index: {}]   ;;  %s4293_s7 = inlined_call_operand.hbm [shape: f32[512,128], index: 7, kind: output, shape index: {}]  }
   0x1   :  { %13 = vsyncpa [#allocation6], 0 }
   0x2   :  { %14 = vsyncpa [#allocation4], 0  ;;  %s2325_s24 = smov [#allocation5]   ;;  %s2231_s28 = scalar_lea.hbm %s4287_s1, 1024 }
   0x3   :  { %s32_s25 = sshll.u32 %s2325_s24, 4  ;;  %p2232_p0 = scmp.ne.s32.totalorder %s4287_s1, %s2231_s28  ;;  %s33_s25 = int_to_ptr.vmem [resolvable:$true] %s32_s25 }
   0x4   :  { %p2235_p1 = scmp.lt.u32.totalorder %s2231_s28, %s4287_s1 }
   0x6   :  { %p2237_p2 = pnand %p2235_p1, %p2232_p0 }
   0x8   :  { %2240 = shalt.err (!%p2237_p2)
}
   0x9   :  { %s2241_s10 = scalar_lea.vmem %s33_s25, 1024  ;;  %p2246_p4 = scmp.lt.s32.totalorder %s33_s25, %s33_s25 }
   0xa   :  { %p2242_p3 = scmp.ne.s32.totalorder %s33_s25, %s2241_s10  ;;  %p2247_p5 = scmp.lt.s32.totalorder %s2241_s10, %s2241_s10 }
   0xc   :  { %p2248_p6 = por %p2247_p5, %p2246_p4 }
   0xe   :  { %p2249_p7 = pnand %p2248_p6, %p2242_p3 }
  0x10   :  { %2252 = shalt.err (!%p2249_p7)
}
  0x11   :  { %s2326_s11 = smov 64   ;;  %s2327_s12 = smov 4  }
  0x12   :  { %38 = dma.hbm_to_vmem [thread:$0]  %s4287_s1, 1024, %s33_s25, [#allocation6], %s2326_s11, %s2326_s11, %s2327_s12  }
  0x13   :  { %s2328_s15 = smov [#allocation2]   ;;  %s2253_s19 = scalar_lea.hbm %s4286_s0, 8192 }
  0x14   :  { %s20_s16 = sshll.u32 %s2328_s15, 4  ;;  %p2254_p8 = scmp.ne.s32.totalorder %s4286_s0, %s2253_s19  ;;  %s21_s16 = int_to_ptr.vmem [resolvable:$true] %s20_s16 }
  0x15   :  { %p2257_p9 = scmp.lt.u32.totalorder %s2253_s19, %s4286_s0 }
  0x17   :  { %p2259_p10 = pnand %p2257_p9, %p2254_p8 }
  0x19   :  { %2262 = shalt.err (!%p2259_p10)
}
  0x1a   :  { %s2263_s24 = scalar_lea.vmem %s21_s16, 8192  ;;  %p2268_p12 = scmp.lt.s32.totalorder %s21_s16, %s21_s16 }
  0x1b   :  { %p2264_p11 = scmp.ne.s32.totalorder %s21_s16, %s2263_s24  ;;  %p2269_p13 = scmp.lt.s32.totalorder %s2263_s24, %s2263_s24 }
  0x1d   :  { %p2270_p0 = por %p2269_p13, %p2268_p12 }
  0x1f   :  { %p2271_p1 = pnand %p2270_p0, %p2264_p11 }
  0x21   :  { %2274 = shalt.err (!%p2271_p1)
}
  0x22   :  { %s2329_s1 = smov 128   ;;  %s2330_s25 = smov 8  }
  0x23   :  { %26 = dma.hbm_to_vmem [thread:$0]  %s4286_s0, 8192, %s21_s16, [#allocation3], %s2329_s1, %s2329_s1, %s2330_s25  }
  0x24   :  { %s2331_s28 = smov [#allocation7]   ;;  %s2275_s9 = scalar_lea.hbm %s4290_s4, 1024 }
  0x25   :  { %s48_s29 = sshll.u32 %s2331_s28, 4  ;;  %p2276_p2 = scmp.ne.s32.totalorder %s4290_s4, %s2275_s9  ;;  %s49_s29 = int_to_ptr.vmem [resolvable:$true] %s48_s29 }
  0x26   :  { %p2279_p3 = scmp.lt.u32.totalorder %s2275_s9, %s4290_s4 }
  0x28   :  { %p2281_p4 = pnand %p2279_p3, %p2276_p2 }
  0x2a   :  { %2284 = shalt.err (!%p2281_p4)
}
  0x2b   :  { %s2285_s17 = scalar_lea.vmem %s49_s29, 1024  ;;  %p2290_p6 = scmp.lt.s32.totalorder %s49_s29, %s49_s29 }
  0x2c   :  { %p2286_p5 = scmp.ne.s32.totalorder %s49_s29, %s2285_s17  ;;  %p2291_p7 = scmp.lt.s32.totalorder %s2285_s17, %s2285_s17 }
  0x2e   :  { %p2292_p8 = por %p2291_p7, %p2290_p6 }
  0x30   :  { %p2293_p9 = pnand %p2292_p8, %p2286_p5 }
  0x32   :  { %2296 = shalt.err (!%p2293_p9)
}
  0x33   :  { %54 = dma.hbm_to_vmem [thread:$0]  %s4290_s4, 1024, %s49_s29, [#allocation6], %s2326_s11, %s2326_s11, %s2327_s12  }
  0x34   :  { %2319 = dma.done.wait [#allocation3], 8192  }
  0x35   :  { %2320 = vsyncadd [#allocation3], 4294959104 }
  0x36   :  { %2321 = dma.done.wait [#allocation6], 2048  }
  0x37   :  { %2322 = vsyncadd [#allocation6], 4294965248  ;;  %v2147_v0 = vld [vmem:[#allocation5] sm:$0xff]   ;;  %v2148_v1 = vld [vmem:[#allocation5 + $0x8] sm:$0xff]  }
  0x38   :  { %1979 = vmatprep.subr.bf16.mxu0 %v2147_v0  ;;  %v2149_v2 = vld [vmem:[#allocation5 + $0x10] sm:$0xff]   ;;  %v2150_v3 = vld [vmem:[#allocation5 + $0x18] sm:$0xff]   ;;  %v69_v4 = vld [vmem:[#allocation2] sm:$0xff] }
  0x39   :  { %1980 = vmatpush3.bf16.msra.mxu0 %v2147_v0  ;;  %v70_v5 = vld [vmem:[#allocation2 + $0x8] sm:$0xff]  ;;  %v2151_v7 = vld [vmem:[#allocation5 + $0x20] sm:$0xff]   ;;  %v2153_v9 = vld [vmem:[#allocation5 + $0x30] sm:$0xff]  }
  0x3a   :  { %1981 = vmatprep.subr.bf16.mxu0 %v2148_v1  ;;  %v133_v6 = vpack.c.bf16 %v70_v5, %v69_v4  ;;  %v2152_v8 = vld [vmem:[#allocation5 + $0x28] sm:$0xff]   ;;  %v2154_v10 = vld [vmem:[#allocation5 + $0x38] sm:$0xff]   ;;  %v71_v11 = vld [vmem:[#allocation2 + $0x10] sm:$0xff] }
  0x3b   :  { %v72_v12 = vld [vmem:[#allocation2 + $0x18] sm:$0xff]  ;;  %v73_v13 = vld [vmem:[#allocation2 + $0x20] sm:$0xff]  ;;  %v74_v14 = vld [vmem:[#allocation2 + $0x28] sm:$0xff] }
  0x3c   :  { %1995 = vmatprep.mubr.bf16.mxu0 %v133_v6  ;;  %v134_v15 = vpack.c.bf16 %v72_v12, %v71_v11  ;;  %v135_v16 = vpack.c.bf16 %v74_v14, %v73_v13  ;;  %v75_v17 = vld [vmem:[#allocation2 + $0x30] sm:$0xff]  ;;  %v76_v18 = vld [vmem:[#allocation2 + $0x38] sm:$0xff]  ;;  %v77_v19 = vld [vmem:[#allocation2 + $0x40] sm:$0xff] }
  0x3d   :  { %1982 = vmatpush3.bf16.msra.mxu0 %v2148_v1  ;;  %v78_v20 = vld [vmem:[#allocation2 + $0x48] sm:$0xff]  ;;  %v136_v21 = vpack.c.bf16 %v76_v18, %v75_v17  ;;  %v79_v23 = vld [vmem:[#allocation2 + $0x50] sm:$0xff]  ;;  %v80_v24 = vld [vmem:[#allocation2 + $0x58] sm:$0xff] }
  0x3e   :  { %1983 = vmatprep.subr.bf16.mxu0 %v2149_v2  ;;  %v137_v22 = vpack.c.bf16 %v78_v20, %v77_v19  ;;  %v81_v25 = vld [vmem:[#allocation2 + $0x60] sm:$0xff]  ;;  %v82_v26 = vld [vmem:[#allocation2 + $0x68] sm:$0xff]  ;;  %v138_v27 = vpack.c.bf16 %v80_v24, %v79_v23  ;;  %v83_v29 = vld [vmem:[#allocation2 + $0x70] sm:$0xff] }
  0x3f   :  { %v139_v28 = vpack.c.bf16 %v82_v26, %v81_v25  ;;  %v84_v30 = vld [vmem:[#allocation2 + $0x78] sm:$0xff]  ;;  %v85_v31 = vld [vmem:[#allocation2 + $0x80] sm:$0xff]  ;;  %v86_v32 = vld [vmem:[#allocation2 + $0x88] sm:$0xff] }
  0x40   :  { %v140_v33 = vpack.c.bf16 %v84_v30, %v83_v29  ;;  %v141_v34 = vpack.c.bf16 %v86_v32, %v85_v31  ;;  %v87_v35 = vld [vmem:[#allocation2 + $0x90] sm:$0xff]  ;;  %v88_v36 = vld [vmem:[#allocation2 + $0x98] sm:$0xff]  ;;  %v89_v37 = vld [vmem:[#allocation2 + $0xa0] sm:$0xff] }
  0x41   :  { %1984 = vmatpush3.bf16.msra.mxu0 %v2149_v2  ;;  %v90_v38 = vld [vmem:[#allocation2 + $0xa8] sm:$0xff]  ;;  %v142_v39 = vpack.c.bf16 %v88_v36, %v87_v35  ;;  %v91_v41 = vld [vmem:[#allocation2 + $0xb0] sm:$0xff]  ;;  %v92_v42 = vld [vmem:[#allocation2 + $0xb8] sm:$0xff] }
  0x42   :  { %1985 = vmatprep.subr.bf16.mxu0 %v2150_v3  ;;  %v143_v40 = vpack.c.bf16 %v90_v38, %v89_v37  ;;  %v93_v43 = vld [vmem:[#allocation2 + $0xc0] sm:$0xff]  ;;  %v94_v44 = vld [vmem:[#allocation2 + $0xc8] sm:$0xff]  ;;  %v144_v45 = vpack.c.bf16 %v92_v42, %v91_v41  ;;  %v95_v47 = vld [vmem:[#allocation2 + $0xd0] sm:$0xff] }
  0x43   :  { %v145_v46 = vpack.c.bf16 %v94_v44, %v93_v43  ;;  %v96_v48 = vld [vmem:[#allocation2 + $0xd8] sm:$0xff]  ;;  %v97_v49 = vld [vmem:[#allocation2 + $0xe0] sm:$0xff]  ;;  %v98_v50 = vld [vmem:[#allocation2 + $0xe8] sm:$0xff] }
  0x44   :  { %v146_v51 = vpack.c.bf16 %v96_v48, %v95_v47  ;;  %v147_v52 = vpack.c.bf16 %v98_v50, %v97_v49  ;;  %v99_v53 = vld [vmem:[#allocation2 + $0xf0] sm:$0xff]  ;;  %v100_v54 = vld [vmem:[#allocation2 + $0xf8] sm:$0xff]  ;;  %v101_v55 = vld [vmem:[#allocation2 + $0x100] sm:$0xff] }
  0x45   :  { %1986 = vmatpush3.bf16.msra.mxu0 %v2150_v3  ;;  %v102_v56 = vld [vmem:[#allocation2 + $0x108] sm:$0xff]  ;;  %v148_v57 = vpack.c.bf16 %v100_v54, %v99_v53  ;;  %v103_v59 = vld [vmem:[#allocation2 + $0x110] sm:$0xff]  ;;  %v104_v60 = vld [vmem:[#allocation2 + $0x118] sm:$0xff] }
  0x46   :  { %1987 = vmatprep.subr.bf16.mxu0 %v2151_v7  ;;  %v149_v58 = vpack.c.bf16 %v102_v56, %v101_v55  ;;  %v105_v61 = vld [vmem:[#allocation2 + $0x120] sm:$0xff]  ;;  %v106_v62 = vld [vmem:[#allocation2 + $0x128] sm:$0xff]  ;;  %v150_v63 = vpack.c.bf16 %v104_v60, %v103_v59  ;;  %v107_v1 = vld [vmem:[#allocation2 + $0x130] sm:$0xff] }
  0x47   :  { %v151_v0 = vpack.c.bf16 %v106_v62, %v105_v61  ;;  %v108_v2 = vld [vmem:[#allocation2 + $0x138] sm:$0xff]  ;;  %v109_v3 = vld [vmem:[#allocation2 + $0x140] sm:$0xff]  ;;  %v110_v4 = vld [vmem:[#allocation2 + $0x148] sm:$0xff] }
  0x48   :  { %v152_v5 = vpack.c.bf16 %v108_v2, %v107_v1  ;;  %v153_v6 = vpack.c.bf16 %v110_v4, %v109_v3  ;;  %v115_v13 = vld [vmem:[#allocation2 + $0x170] sm:$0xff]  ;;  %v116_v14 = vld [vmem:[#allocation2 + $0x178] sm:$0xff] }
  0x49   :  { %1988 = vmatpush3.bf16.msra.mxu0 %v2151_v7  ;;  %v111_v7 = vld [vmem:[#allocation2 + $0x150] sm:$0xff]  ;;  %v156_v17 = vpack.c.bf16 %v116_v14, %v115_v13  ;;  %v120_v20 = vld [vmem:[#allocation2 + $0x198] sm:$0xff] }
  0x4a   :  { %1989 = vmatprep.subr.bf16.mxu0 %v2152_v8  ;;  %v119_v19 = vld [vmem:[#allocation2 + $0x190] sm:$0xff]  ;;  %v124_v26 = vld [vmem:[#allocation2 + $0x1b8] sm:$0xff] }
  0x4b   :  { %v158_v23 = vpack.c.bf16 %v120_v20, %v119_v19  ;;  %v123_v25 = vld [vmem:[#allocation2 + $0x1b0] sm:$0xff]  ;;  %v128_v32 = vld [vmem:[#allocation2 + $0x1d8] sm:$0xff] }
  0x4c   :  { %v160_v29 = vpack.c.bf16 %v124_v26, %v123_v25  ;;  %v127_v31 = vld [vmem:[#allocation2 + $0x1d0] sm:$0xff]  ;;  %v132_v38 = vld [vmem:[#allocation2 + $0x1f8] sm:$0xff] }
  0x4d   :  { %1990 = vmatpush3.bf16.msra.mxu0 %v2152_v8  ;;  %v112_v8 = vld [vmem:[#allocation2 + $0x158] sm:$0xff]  ;;  %v162_v35 = vpack.c.bf16 %v128_v32, %v127_v31  ;;  %v131_v37 = vld [vmem:[#allocation2 + $0x1f0] sm:$0xff] }
  0x4e   :  { %1991 = vmatprep.subr.bf16.mxu0 %v2153_v9  ;;  %v154_v11 = vpack.c.bf16 %v112_v8, %v111_v7 }
  0x51   :  { %1992 = vmatpush3.bf16.msra.mxu0 %v2153_v9  ;;  %v113_v9 = vld [vmem:[#allocation2 + $0x160] sm:$0xff] }
  0x52   :  { %1993 = vmatprep.subr.bf16.mxu0 %v2154_v10 }
  0x55   :  { %1994 = vmatpush3.bf16.msra.mxu0 %v2154_v10  ;;  %v114_v10 = vld [vmem:[#allocation2 + $0x168] sm:$0xff] }
  0x56   :  { %v155_v12 = vpack.c.bf16 %v114_v10, %v113_v9 }
  0x58   :  { %1996 = vmatmul.mubr.bf16.vlgmr.msra.gmra.mrb[0].mxu0 %v134_v15  ;;  %v117_v15 = vld [vmem:[#allocation2 + $0x180] sm:$0xff] }
  0x59   :  { %1999 = vmatprep.mubr.bf16.mxu0 %v135_v16  ;;  %v118_v16 = vld [vmem:[#allocation2 + $0x188] sm:$0xff] }
  0x5a   :  { %v157_v18 = vpack.c.bf16 %v118_v16, %v117_v15 }
  0x60   :  { %2000 = vmatmul.mubr.bf16.gmra.mrb[4].mxu0 %v136_v21  ;;  %v121_v21 = vld [vmem:[#allocation2 + $0x1a0] sm:$0xff] }
  0x61   :  { %2003 = vmatprep.mubr.bf16.mxu0 %v137_v22  ;;  %v122_v22 = vld [vmem:[#allocation2 + $0x1a8] sm:$0xff] }
  0x62   :  { %v159_v24 = vpack.c.bf16 %v122_v22, %v121_v21 }
  0x68   :  { %2004 = vmatmul.mubr.bf16.gmra.mrb[8].mxu0 %v138_v27  ;;  %v125_v27 = vld [vmem:[#allocation2 + $0x1c0] sm:$0xff] }
  0x69   :  { %2007 = vmatprep.mubr.bf16.mxu0 %v139_v28  ;;  %v126_v28 = vld [vmem:[#allocation2 + $0x1c8] sm:$0xff] }
  0x6a   :  { %v161_v30 = vpack.c.bf16 %v126_v28, %v125_v27 }
  0x70   :  { %2008 = vmatmul.mubr.bf16.gmra.mrb[12].mxu0 %v140_v33  ;;  %v129_v33 = vld [vmem:[#allocation2 + $0x1e0] sm:$0xff] }
  0x71   :  { %2011 = vmatprep.mubr.bf16.mxu0 %v141_v34  ;;  %v130_v34 = vld [vmem:[#allocation2 + $0x1e8] sm:$0xff] }
  0x72   :  { %v163_v36 = vpack.c.bf16 %v130_v34, %v129_v33 }
  0x78   :  { %2012 = vmatmul.mubr.bf16.gmra.mrb[16].mxu0 %v142_v39  ;;  %v164_v39 = vpack.c.bf16 %v132_v38, %v131_v37 }
  0x79   :  { %2015 = vmatprep.mubr.bf16.mxu0 %v143_v40 }
  0x80   :  { %2016 = vmatmul.mubr.bf16.gmra.mrb[20].mxu0 %v144_v45 }
  0x81   :  { %2019 = vmatprep.mubr.bf16.mxu0 %v145_v46 }
  0x88   :  { %2020 = vmatmul.mubr.bf16.gmra.mrb[24].mxu0 %v146_v51 }
  0x89   :  { %2023 = vmatprep.mubr.bf16.mxu0 %v147_v52 }
  0x90   :  { %2024 = vmatmul.mubr.bf16.gmra.mrb[28].mxu0 %v148_v57 }
  0x91   :  { %2027 = vmatprep.mubr.bf16.mxu0 %v149_v58 }
  0x98   :  { %2028 = vmatmul.mubr.bf16.gmra.mrb[32].mxu0 %v150_v63 }
  0x99   :  { %2031 = vmatprep.mubr.bf16.mxu0 %v151_v0 }
  0xa0   :  { %2032 = vmatmul.mubr.bf16.gmra.mrb[36].mxu0 %v152_v5 }
  0xa1   :  { %2035 = vmatprep.mubr.bf16.mxu0 %v153_v6 }
  0xa8   :  { %2036 = vmatmul.mubr.bf16.gmra.mrb[40].mxu0 %v154_v11 }
  0xa9   :  { %2039 = vmatprep.mubr.bf16.mxu0 %v155_v12 }
  0xb0   :  { %2040 = vmatmul.mubr.bf16.gmra.mrb[44].mxu0 %v156_v17 }
  0xb1   :  { %2043 = vmatprep.mubr.bf16.mxu0 %v157_v18 }
  0xb8   :  { %2044 = vmatmul.mubr.bf16.gmra.mrb[48].mxu0 %v158_v23 }
  0xb9   :  { %2047 = vmatprep.mubr.bf16.mxu0 %v159_v24 }
  0xc0   :  { %2048 = vmatmul.mubr.bf16.gmra.mrb[52].mxu0 %v160_v29 }
  0xc1   :  { %2051 = vmatprep.mubr.bf16.mxu0 %v161_v30 }
  0xc8   :  { %2052 = vmatmul.mubr.bf16.gmra.mrb[56].mxu0 %v162_v35 }
  0xc9   :  { %2055 = vmatprep.mubr.bf16.mxu0 %v163_v36 }
  0xd0   :  { %2056 = vmatmul.mubr.bf16.gmra.mrb[60].mxu0 %v164_v39 }
 0x12b   :  { %v2418_v40 = vpop.f32.mrb[0].mxu0 }
 0x12c   :  { %v2420_v41 = vpop.f32.mrb[1].mxu0  ;;  %v590_v47 = vmul.f32 %v2418_v40, %v2418_v40 }
 0x12d   :  { %v2422_v42 = vpop.f32.mrb[2].mxu0  ;;  %v588_v44 = vmul.f32 %v2420_v41, %v2420_v41 }
 0x12e   :  { %v2424_v43 = vpop.f32.mrb[3].mxu0  ;;  %v591_v50 = vmul.f32 %v2422_v42, %v2422_v42 }
 0x12f   :  { %v518_v45 = vadd.f32 %v2424_v43, %v2420_v41  ;;  %v589_v46 = vmul.f32 %v2424_v43, %v2424_v43 }
 0x131   :  { %v519_v48 = vadd.f32 %v2418_v40, %v518_v45  ;;  %v652_v49 = vadd.f32 %v589_v46, %v588_v44 }
 0x133   :  { %v653_v51 = vadd.f32 %v652_v49, %v590_v47  ;;  %v2437_v52 = vpop.f32.mrb[4].mxu0  ;;  %v520_v53 = vadd.f32 %v2422_v42, %v519_v48 }
 0x134   :  { %v2440_v54 = vpop.f32.mrb[5].mxu0  ;;  %v594_v63 = vmul.f32 %v2437_v52, %v2437_v52 }
 0x135   :  { %v521_v55 = vadd.f32 %v520_v53, %v2440_v54  ;;  %v592_v56 = vmul.f32 %v2440_v54, %v2440_v54  ;;  %v654_v57 = vadd.f32 %v653_v51, %v591_v50  ;;  %v2445_v58 = vpop.f32.mrb[6].mxu0 }
 0x136   :  { %v2447_v59 = vpop.f32.mrb[7].mxu0  ;;  %v595_v2 = vmul.f32 %v2445_v58, %v2445_v58 }
 0x137   :  { %v655_v60 = vadd.f32 %v654_v57, %v592_v56  ;;  %v522_v61 = vadd.f32 %v521_v55, %v2447_v59  ;;  %v593_v62 = vmul.f32 %v2447_v59, %v2447_v59 }
 0x139   :  { %v523_v0 = vadd.f32 %v2437_v52, %v522_v61  ;;  %v656_v1 = vadd.f32 %v655_v60, %v593_v62 }
 0x13b   :  { %v657_v3 = vadd.f32 %v656_v1, %v594_v63  ;;  %v2457_v4 = vpop.f32.mrb[8].mxu0  ;;  %v524_v5 = vadd.f32 %v2445_v58, %v523_v0 }
 0x13c   :  { %v2460_v6 = vpop.f32.mrb[9].mxu0  ;;  %v598_v15 = vmul.f32 %v2457_v4, %v2457_v4 }
 0x13d   :  { %v525_v7 = vadd.f32 %v524_v5, %v2460_v6  ;;  %v596_v8 = vmul.f32 %v2460_v6, %v2460_v6  ;;  %v658_v9 = vadd.f32 %v657_v3, %v595_v2  ;;  %v2465_v10 = vpop.f32.mrb[10].mxu0  ;;  %v2155_v3 = vld [vmem:[#allocation7] sm:$0xff]  }
 0x13e   :  { %v2467_v11 = vpop.f32.mrb[11].mxu0  ;;  %v599_v18 = vmul.f32 %v2465_v10, %v2465_v10  ;;  %2059 = vmatprep.subr.bf16.mxu1 %v2155_v3 }
 0x13f   :  { %v659_v12 = vadd.f32 %v658_v9, %v596_v8  ;;  %v526_v13 = vadd.f32 %v525_v7, %v2467_v11  ;;  %v597_v14 = vmul.f32 %v2467_v11, %v2467_v11  ;;  %2060 = vmatpush3.bf16.msra.mxu1 %v2155_v3 }
 0x141   :  { %v527_v16 = vadd.f32 %v2457_v4, %v526_v13  ;;  %v660_v17 = vadd.f32 %v659_v12, %v597_v14 }
 0x143   :  { %v661_v19 = vadd.f32 %v660_v17, %v598_v15  ;;  %v2477_v20 = vpop.f32.mrb[12].mxu0  ;;  %v528_v21 = vadd.f32 %v2465_v10, %v527_v16  ;;  %v2156_v15 = vld [vmem:[#allocation7 + $0x8] sm:$0xff]  }
 0x144   :  { %v2480_v22 = vpop.f32.mrb[13].mxu0  ;;  %v602_v31 = vmul.f32 %v2477_v20, %v2477_v20  ;;  %2061 = vmatprep.subr.bf16.mxu1 %v2156_v15 }
 0x145   :  { %v529_v23 = vadd.f32 %v528_v21, %v2480_v22  ;;  %v600_v24 = vmul.f32 %v2480_v22, %v2480_v22  ;;  %v662_v25 = vadd.f32 %v661_v19, %v599_v18  ;;  %v2485_v26 = vpop.f32.mrb[14].mxu0  ;;  %2062 = vmatpush3.bf16.msra.mxu1 %v2156_v15 }
 0x146   :  { %v2487_v27 = vpop.f32.mrb[15].mxu0  ;;  %v603_v34 = vmul.f32 %v2485_v26, %v2485_v26 }
 0x147   :  { %v663_v28 = vadd.f32 %v662_v25, %v600_v24  ;;  %v530_v29 = vadd.f32 %v529_v23, %v2487_v27  ;;  %v601_v30 = vmul.f32 %v2487_v27, %v2487_v27 }
 0x149   :  { %v531_v32 = vadd.f32 %v2477_v20, %v530_v29  ;;  %v664_v33 = vadd.f32 %v663_v28, %v601_v30  ;;  %v2157_v29 = vld [vmem:[#allocation7 + $0x10] sm:$0xff]  }
 0x14a   :  { %2063 = vmatprep.subr.bf16.mxu1 %v2157_v29 }
 0x14b   :  { %v665_v35 = vadd.f32 %v664_v33, %v602_v31  ;;  %v2497_v36 = vpop.f32.mrb[16].mxu0  ;;  %v532_v37 = vadd.f32 %v2485_v26, %v531_v32  ;;  %2064 = vmatpush3.bf16.msra.mxu1 %v2157_v29 }
 0x14c   :  { %v2500_v38 = vpop.f32.mrb[17].mxu0  ;;  %v606_v51 = vmul.f32 %v2497_v36, %v2497_v36 }
 0x14d   :  { %v533_v39 = vadd.f32 %v532_v37, %v2500_v38  ;;  %v604_v44 = vmul.f32 %v2500_v38, %v2500_v38  ;;  %v666_v45 = vadd.f32 %v665_v35, %v603_v34  ;;  %v2505_v46 = vpop.f32.mrb[18].mxu0 }
 0x14e   :  { %v2507_v47 = vpop.f32.mrb[19].mxu0  ;;  %v607_v56 = vmul.f32 %v2505_v46, %v2505_v46 }
 0x14f   :  { %v667_v48 = vadd.f32 %v666_v45, %v604_v44  ;;  %v534_v49 = vadd.f32 %v533_v39, %v2507_v47  ;;  %v605_v50 = vmul.f32 %v2507_v47, %v2507_v47  ;;  %v2158_v39 = vld [vmem:[#allocation7 + $0x18] sm:$0xff]  }
 0x150   :  { %2065 = vmatprep.subr.bf16.mxu1 %v2158_v39 }
 0x151   :  { %v535_v53 = vadd.f32 %v2497_v36, %v534_v49  ;;  %v668_v55 = vadd.f32 %v667_v48, %v605_v50  ;;  %2066 = vmatpush3.bf16.msra.mxu1 %v2158_v39 }
 0x153   :  { %v669_v57 = vadd.f32 %v668_v55, %v606_v51  ;;  %v2517_v60 = vpop.f32.mrb[20].mxu0  ;;  %v536_v61 = vadd.f32 %v2505_v46, %v535_v53 }
 0x154   :  { %v2520_v62 = vpop.f32.mrb[21].mxu0  ;;  %v610_v12 = vmul.f32 %v2517_v60, %v2517_v60 }
 0x155   :  { %v537_v63 = vadd.f32 %v536_v61, %v2520_v62  ;;  %v608_v0 = vmul.f32 %v2520_v62, %v2520_v62  ;;  %v670_v1 = vadd.f32 %v669_v57, %v607_v56  ;;  %v2525_v2 = vpop.f32.mrb[22].mxu0  ;;  %v2159_v57 = vld [vmem:[#allocation7 + $0x20] sm:$0xff]  }
 0x156   :  { %v2527_v5 = vpop.f32.mrb[23].mxu0  ;;  %v611_v16 = vmul.f32 %v2525_v2, %v2525_v2  ;;  %2067 = vmatprep.subr.bf16.mxu1 %v2159_v57 }
 0x157   :  { %v671_v7 = vadd.f32 %v670_v1, %v608_v0  ;;  %v538_v8 = vadd.f32 %v537_v63, %v2527_v5  ;;  %v609_v9 = vmul.f32 %v2527_v5, %v2527_v5  ;;  %2068 = vmatpush3.bf16.msra.mxu1 %v2159_v57 }
 0x159   :  { %v539_v13 = vadd.f32 %v2517_v60, %v538_v8  ;;  %v672_v14 = vadd.f32 %v671_v7, %v609_v9  ;;  %v2160_v9 = vld [vmem:[#allocation7 + $0x28] sm:$0xff]  }
 0x15a   :  { %2069 = vmatprep.subr.bf16.mxu1 %v2160_v9 }
 0x15b   :  { %v673_v17 = vadd.f32 %v672_v14, %v610_v12  ;;  %v2537_v18 = vpop.f32.mrb[24].mxu0  ;;  %v540_v19 = vadd.f32 %v2525_v2, %v539_v13  ;;  %2070 = vmatpush3.bf16.msra.mxu1 %v2160_v9 }
 0x15c   :  { %v2540_v21 = vpop.f32.mrb[25].mxu0  ;;  %v614_v34 = vmul.f32 %v2537_v18, %v2537_v18 }
 0x15d   :  { %v541_v23 = vadd.f32 %v540_v19, %v2540_v21  ;;  %v612_v24 = vmul.f32 %v2540_v21, %v2540_v21  ;;  %v674_v25 = vadd.f32 %v673_v17, %v611_v16  ;;  %v2545_v28 = vpop.f32.mrb[26].mxu0 }
 0x15e   :  { %v2547_v30 = vpop.f32.mrb[27].mxu0  ;;  %v615_v44 = vmul.f32 %v2545_v28, %v2545_v28 }
 0x15f   :  { %v675_v31 = vadd.f32 %v674_v25, %v612_v24  ;;  %v542_v32 = vadd.f32 %v541_v23, %v2547_v30  ;;  %v613_v33 = vmul.f32 %v2547_v30, %v2547_v30  ;;  %v2161_v25 = vld [vmem:[#allocation7 + $0x30] sm:$0xff]  }
 0x160   :  { %2071 = vmatprep.subr.bf16.mxu1 %v2161_v25 }
 0x161   :  { %v543_v35 = vadd.f32 %v2537_v18, %v542_v32  ;;  %v676_v37 = vadd.f32 %v675_v31, %v613_v33  ;;  %2072 = vmatpush3.bf16.msra.mxu1 %v2161_v25 }
 0x163   :  { %v677_v45 = vadd.f32 %v676_v37, %v614_v34  ;;  %v2557_v48 = vpop.f32.mrb[28].mxu0  ;;  %v544_v49 = vadd.f32 %v2545_v28, %v543_v35  ;;  %v2162_v34 = vld [vmem:[#allocation7 + $0x38] sm:$0xff]  }
 0x164   :  { %v2560_v50 = vpop.f32.mrb[29].mxu0  ;;  %v618_v3 = vmul.f32 %v2557_v48, %v2557_v48  ;;  %2073 = vmatprep.subr.bf16.mxu1 %v2162_v34 }
 0x165   :  { %v545_v51 = vadd.f32 %v544_v49, %v2560_v50  ;;  %v616_v53 = vmul.f32 %v2560_v50, %v2560_v50  ;;  %v678_v55 = vadd.f32 %v677_v45, %v615_v44  ;;  %v2565_v56 = vpop.f32.mrb[30].mxu0  ;;  %2074 = vmatpush3.bf16.msra.mxu1 %v2162_v34 }
 0x166   :  { %v2567_v61 = vpop.f32.mrb[31].mxu0  ;;  %v619_v12 = vmul.f32 %v2565_v56, %v2565_v56 }
 0x167   :  { %v679_v63 = vadd.f32 %v678_v55, %v616_v53  ;;  %v546_v0 = vadd.f32 %v545_v51, %v2567_v61  ;;  %v617_v1 = vmul.f32 %v2567_v61, %v2567_v61 }
 0x169   :  { %v547_v7 = vadd.f32 %v2557_v48, %v546_v0  ;;  %v680_v8 = vadd.f32 %v679_v63, %v617_v1 }
 0x16b   :  { %v681_v13 = vadd.f32 %v680_v8, %v618_v3  ;;  %v2577_v14 = vpop.f32.mrb[32].mxu0  ;;  %v548_v15 = vadd.f32 %v2565_v56, %v547_v7 }
 0x16c   :  { %v2580_v16 = vpop.f32.mrb[33].mxu0  ;;  %v622_v35 = vmul.f32 %v2577_v14, %v2577_v14 }
 0x16d   :  { %v549_v17 = vadd.f32 %v548_v15, %v2580_v16  ;;  %v620_v19 = vmul.f32 %v2580_v16, %v2580_v16  ;;  %v682_v23 = vadd.f32 %v681_v13, %v619_v12  ;;  %v2585_v24 = vpop.f32.mrb[34].mxu0 }
 0x16e   :  { %v2587_v29 = vpop.f32.mrb[35].mxu0  ;;  %v623_v44 = vmul.f32 %v2585_v24, %v2585_v24 }
 0x16f   :  { %v683_v31 = vadd.f32 %v682_v23, %v620_v19  ;;  %v550_v32 = vadd.f32 %v549_v17, %v2587_v29  ;;  %v621_v33 = vmul.f32 %v2587_v29, %v2587_v29 }
 0x171   :  { %v551_v37 = vadd.f32 %v2577_v14, %v550_v32  ;;  %v684_v39 = vadd.f32 %v683_v31, %v621_v33 }
 0x173   :  { %v685_v45 = vadd.f32 %v684_v39, %v622_v35  ;;  %v2597_v49 = vpop.f32.mrb[36].mxu0  ;;  %v552_v51 = vadd.f32 %v2585_v24, %v551_v37 }
 0x174   :  { %4345 = vst [vmem:[#allocation12_spill] sm:$0xff] %v2597_v49  ;;  %v2600_v53 = vpop.f32.mrb[37].mxu0  ;;  %v626_v9 = vmul.f32 %v2597_v49, %v2597_v49 }
 0x175   :  { %v553_v55 = vadd.f32 %v552_v51, %v2600_v53  ;;  %v624_v57 = vmul.f32 %v2600_v53, %v2600_v53  ;;  %v686_v63 = vadd.f32 %v685_v45, %v623_v44  ;;  %v2605_v0 = vpop.f32.mrb[38].mxu0 }
 0x176   :  { %4346 = vst [vmem:[#allocation13_spill] sm:$0xff] %v2605_v0  ;;  %v2607_v1 = vpop.f32.mrb[39].mxu0  ;;  %v627_v15 = vmul.f32 %v2605_v0, %v2605_v0 }
 0x177   :  { %v687_v3 = vadd.f32 %v686_v63, %v624_v57  ;;  %v554_v7 = vadd.f32 %v553_v55, %v2607_v1  ;;  %v625_v8 = vmul.f32 %v2607_v1, %v2607_v1 }
 0x179   :  { %v555_v12 = vadd.f32 %v2597_v49, %v554_v7  ;;  %v688_v13 = vadd.f32 %v687_v3, %v625_v8 }
 0x17b   :  { %v689_v17 = vadd.f32 %v688_v13, %v626_v9  ;;  %v2617_v19 = vpop.f32.mrb[40].mxu0  ;;  %v556_v23 = vadd.f32 %v2605_v0, %v555_v12 }
 0x17c   :  { %4347 = vst [vmem:[#allocation14_spill] sm:$0xff] %v2617_v19  ;;  %v2620_v25 = vpop.f32.mrb[41].mxu0  ;;  %v630_v45 = vmul.f32 %v2617_v19, %v2617_v19 }
 0x17d   :  { %4348 = vst [vmem:[#allocation15_spill] sm:$0xff] %v2620_v25  ;;  %v557_v31 = vadd.f32 %v556_v23, %v2620_v25  ;;  %v628_v32 = vmul.f32 %v2620_v25, %v2620_v25  ;;  %v690_v33 = vadd.f32 %v689_v17, %v627_v15  ;;  %v2625_v34 = vpop.f32.mrb[42].mxu0 }
 0x17e   :  { %4349 = vst [vmem:[#allocation16_spill] sm:$0xff] %v2625_v34  ;;  %v2627_v35 = vpop.f32.mrb[43].mxu0  ;;  %v631_v57 = vmul.f32 %v2625_v34, %v2625_v34 }
 0x17f   :  { %4350 = vst [vmem:[#allocation17_spill] sm:$0xff] %v2627_v35  ;;  %v691_v37 = vadd.f32 %v690_v33, %v628_v32  ;;  %v558_v39 = vadd.f32 %v557_v31, %v2627_v35  ;;  %v629_v44 = vmul.f32 %v2627_v35, %v2627_v35 }
 0x181   :  { %v559_v51 = vadd.f32 %v2617_v19, %v558_v39  ;;  %v692_v55 = vadd.f32 %v691_v37, %v629_v44 }
 0x183   :  { %v693_v63 = vadd.f32 %v692_v55, %v630_v45  ;;  %v2637_v3 = vpop.f32.mrb[44].mxu0  ;;  %v560_v7 = vadd.f32 %v2625_v34, %v559_v51 }
 0x184   :  { %4351 = vst [vmem:[#allocation18_spill] sm:$0xff] %v2637_v3  ;;  %v2640_v8 = vpop.f32.mrb[45].mxu0  ;;  %v634_v33 = vmul.f32 %v2637_v3, %v2637_v3 }
 0x185   :  { %4352 = vst [vmem:[#allocation19_spill] sm:$0xff] %v2640_v8  ;;  %v561_v9 = vadd.f32 %v560_v7, %v2640_v8  ;;  %v632_v12 = vmul.f32 %v2640_v8, %v2640_v8  ;;  %v694_v13 = vadd.f32 %v693_v63, %v631_v57  ;;  %v2645_v15 = vpop.f32.mrb[46].mxu0 }
 0x186   :  { %4353 = vst [vmem:[#allocation20_spill] sm:$0xff] %v2645_v15  ;;  %v2647_v17 = vpop.f32.mrb[47].mxu0  ;;  %v635_v44 = vmul.f32 %v2645_v15, %v2645_v15 }
 0x187   :  { %4354 = vst [vmem:[#allocation21_spill] sm:$0xff] %v2647_v17  ;;  %v695_v23 = vadd.f32 %v694_v13, %v632_v12  ;;  %v562_v31 = vadd.f32 %v561_v9, %v2647_v17  ;;  %v633_v32 = vmul.f32 %v2647_v17, %v2647_v17 }
 0x189   :  { %v563_v37 = vadd.f32 %v2637_v3, %v562_v31  ;;  %v696_v39 = vadd.f32 %v695_v23, %v633_v32 }
 0x18b   :  { %v697_v45 = vadd.f32 %v696_v39, %v634_v33  ;;  %v2657_v51 = vpop.f32.mrb[48].mxu0  ;;  %v564_v55 = vadd.f32 %v2645_v15, %v563_v37 }
 0x18c   :  { %4355 = vst [vmem:[#allocation22_spill] sm:$0xff] %v2657_v51  ;;  %v2660_v57 = vpop.f32.mrb[49].mxu0  ;;  %v638_v33 = vmul.f32 %v2657_v51, %v2657_v51 }
 0x18d   :  { %4356 = vst [vmem:[#allocation23_spill] sm:$0xff] %v2660_v57  ;;  %v565_v63 = vadd.f32 %v564_v55, %v2660_v57  ;;  %v636_v7 = vmul.f32 %v2660_v57, %v2660_v57  ;;  %v698_v9 = vadd.f32 %v697_v45, %v635_v44  ;;  %v2665_v12 = vpop.f32.mrb[50].mxu0 }
 0x18e   :  { %4357 = vst [vmem:[#allocation24_spill] sm:$0xff] %v2665_v12  ;;  %v2667_v13 = vpop.f32.mrb[51].mxu0  ;;  %v639_v55 = vmul.f32 %v2665_v12, %v2665_v12 }
 0x18f   :  { %4358 = vst [vmem:[#allocation25_spill] sm:$0xff] %v2667_v13  ;;  %v699_v23 = vadd.f32 %v698_v9, %v636_v7  ;;  %v566_v31 = vadd.f32 %v565_v63, %v2667_v13  ;;  %v637_v32 = vmul.f32 %v2667_v13, %v2667_v13 }
 0x191   :  { %v567_v37 = vadd.f32 %v2657_v51, %v566_v31  ;;  %v700_v39 = vadd.f32 %v699_v23, %v637_v32 }
 0x193   :  { %v701_v44 = vadd.f32 %v700_v39, %v638_v33  ;;  %v2677_v45 = vpop.f32.mrb[52].mxu0  ;;  %v568_v57 = vadd.f32 %v2665_v12, %v567_v37 }
 0x194   :  { %4359 = vst [vmem:[#allocation26_spill] sm:$0xff] %v2677_v45  ;;  %v2680_v7 = vpop.f32.mrb[53].mxu0  ;;  %v642_v37 = vmul.f32 %v2677_v45, %v2677_v45 }
 0x195   :  { %4360 = vst [vmem:[#allocation27_spill] sm:$0xff] %v2680_v7  ;;  %v569_v63 = vadd.f32 %v568_v57, %v2680_v7  ;;  %v640_v9 = vmul.f32 %v2680_v7, %v2680_v7  ;;  %v702_v13 = vadd.f32 %v701_v44, %v639_v55  ;;  %v2685_v15 = vpop.f32.mrb[54].mxu0 }
 0x196   :  { %4361 = vst [vmem:[#allocation28_spill] sm:$0xff] %v2685_v15  ;;  %v2687_v31 = vpop.f32.mrb[55].mxu0  ;;  %v643_v7 = vmul.f32 %v2685_v15, %v2685_v15 }
 0x197   :  { %4362 = vst [vmem:[#allocation29_spill] sm:$0xff] %v2687_v31  ;;  %v703_v23 = vadd.f32 %v702_v13, %v640_v9  ;;  %v570_v32 = vadd.f32 %v569_v63, %v2687_v31  ;;  %v641_v33 = vmul.f32 %v2687_v31, %v2687_v31 }
 0x199   :  { %v571_v39 = vadd.f32 %v2677_v45, %v570_v32  ;;  %v704_v57 = vadd.f32 %v703_v23, %v641_v33 }
 0x19b   :  { %v705_v55 = vadd.f32 %v704_v57, %v642_v37  ;;  %v2697_v44 = vpop.f32.mrb[56].mxu0  ;;  %v572_v12 = vadd.f32 %v2685_v15, %v571_v39 }
 0x19c   :  { %4363 = vst [vmem:[#allocation30_spill] sm:$0xff] %v2697_v44  ;;  %v2700_v13 = vpop.f32.mrb[57].mxu0  ;;  %v646_v39 = vmul.f32 %v2697_v44, %v2697_v44 }
 0x19d   :  { %4364 = vst [vmem:[#allocation31_spill] sm:$0xff] %v2700_v13  ;;  %v573_v63 = vadd.f32 %v572_v12, %v2700_v13  ;;  %v644_v9 = vmul.f32 %v2700_v13, %v2700_v13  ;;  %v706_v31 = vadd.f32 %v705_v55, %v643_v7  ;;  %v2705_v51 = vpop.f32.mrb[58].mxu0 }
 0x19e   :  { %4365 = vst [vmem:[#allocation32_spill] sm:$0xff] %v2705_v51  ;;  %v2707_v32 = vpop.f32.mrb[59].mxu0  ;;  %v647_v13 = vmul.f32 %v2705_v51, %v2705_v51 }
 0x19f   :  { %4366 = vst [vmem:[#allocation33_spill] sm:$0xff] %v2707_v32  ;;  %v707_v23 = vadd.f32 %v706_v31, %v644_v9  ;;  %v574_v33 = vadd.f32 %v573_v63, %v2707_v32  ;;  %v645_v37 = vmul.f32 %v2707_v32, %v2707_v32 }
 0x1a1   :  { %v575_v57 = vadd.f32 %v2697_v44, %v574_v33  ;;  %v708_v12 = vadd.f32 %v707_v23, %v645_v37 }
 0x1a3   :  { %v709_v7 = vadd.f32 %v708_v12, %v646_v39  ;;  %v2717_v55 = vpop.f32.mrb[60].mxu0  ;;  %v576_v15 = vadd.f32 %v2705_v51, %v575_v57 }
 0x1a4   :  { %4367 = vst [vmem:[#allocation34_spill] sm:$0xff] %v2717_v55  ;;  %v2720_v31 = vpop.f32.mrb[61].mxu0  ;;  %v650_v39 = vmul.f32 %v2717_v55, %v2717_v55 }
 0x1a5   :  { %4368 = vst [vmem:[#allocation35_spill] sm:$0xff] %v2720_v31  ;;  %v577_v63 = vadd.f32 %v576_v15, %v2720_v31  ;;  %v648_v9 = vmul.f32 %v2720_v31, %v2720_v31  ;;  %v710_v32 = vadd.f32 %v709_v7, %v647_v13  ;;  %v2725_v45 = vpop.f32.mrb[62].mxu0 }
 0x1a6   :  { %v506_v33 = vpop.f32.mrb[63].mxu0  ;;  %v651_v51 = vmul.f32 %v2725_v45, %v2725_v45 }
 0x1a7   :  { %v711_v23 = vadd.f32 %v710_v32, %v648_v9  ;;  %v578_v37 = vadd.f32 %v577_v63, %v506_v33  ;;  %v649_v44 = vmul.f32 %v506_v33, %v506_v33 }
 0x1a9   :  { %v579_v12 = vadd.f32 %v2717_v55, %v578_v37  ;;  %v712_v57 = vadd.f32 %v711_v23, %v649_v44 }
 0x1ab   :  { %v580_v15 = vadd.f32 %v2725_v45, %v579_v12  ;;  %v713_v3 = vadd.f32 %v712_v57, %v650_v39  ;;  %v732_v39 = vlaneseq }
 0x1ad   :  { %v581_v31 = vrot.slane %v580_v15, 4  ;;  %v714_v13 = vadd.f32 %v713_v3, %v651_v51  ;;  %v733_v12 = vshrl.u32 %v732_v39, 7  ;;  %v724_v3 = vld [vmem:[%s4288_s2] sm:$0x1] }
 0x1af   :  { %v582_v7 = vadd.f32 %v581_v31, %v580_v15  ;;  %v715_v17 = vrot.slane %v714_v13, 4 }
 0x1b1   :  { %v583_v8 = vrot.slane %v582_v7, 2  ;;  %v716_v32 = vadd.f32 %v715_v17, %v714_v13  ;;  %v2736_v17 = vsub.s32 0, %v733_v12 }
 0x1b3   :  { %v584_v63 = vadd.f32 %v583_v8, %v582_v7  ;;  %v717_v9 = vrot.slane %v716_v32, 2  ;;  %4369 = vst [vmem:[#allocation36_spill] sm:$0xff] %v2736_v17 }
 0x1b5   :  { %v585_v34 = vrot.slane %v584_v63, 1  ;;  %v718_v19 = vadd.f32 %v717_v9, %v716_v32 }
 0x1b7   :  { %v586_v35 = vadd.f32 %v585_v34, %v584_v63  ;;  %v719_v25 = vrot.slane %v718_v19, 1  ;;  %v728_v34 = vld [vmem:[%s4289_s3] sm:$0x1] }
 0x1b9   :  { %v587_v37 = vmul.f32 0.001953125, %v586_v35  ;;  %v720_v44 = vadd.f32 %v719_v25, %v718_v19 }
 0x1bb   :  { %v721_v23 = vmul.f32 0.001953125, %v720_v44  ;;  %v722_v55 = vmul.f32 %v587_v37, %v587_v37  ;;  %v4381_v44 = vld [vmem:[#allocation15_spill] sm:$0xff] }
 0x1bd   :  { %v723_v0 = vsub.f32 %v721_v23, %v722_v55  ;;  %v4382_v23 = vld [vmem:[#allocation17_spill] sm:$0xff] }
 0x1bf   :  { %v725_v49 = vadd.f32 1e-05, %v723_v0 }
 0x1c1   :  { %2163 = vrsqrt.f32 %v725_v49 }
 0x1cb   :  { %v2164_v8 = vpop.eup %2163 }
 0x1cc   :  { %v727_v51 = vmul.f32 %v2164_v8, %v724_v3  ;;  %v4385_v3 = vld [vmem:[#allocation19_spill] sm:$0xff]  ;;  %v4386_v8 = vld [vmem:[#allocation21_spill] sm:$0xff] }
 0x1ce   :  { %v729_v19 = vmul.f32 %v727_v51, %v587_v37  ;;  %v2742_v25 = vrot.slane %v727_v51, %v2736_v17 }
 0x1d0   :  { %v730_v0 = vsub.f32 %v728_v34, %v729_v19  ;;  %v798_v49 = vmul.f32 %v2742_v25, %v506_v33  ;;  %v2747_v35 = vmul.f32 %v2742_v25, %v2420_v41  ;;  %v2751_v55 = vmul.f32 %v2742_v25, %v2424_v43  ;;  %v4387_v34 = vld [vmem:[#allocation18_spill] sm:$0xff] }
 0x1d1   :  { %v2755_v31 = vmul.f32 %v2418_v40, %v2742_v25  ;;  %v2759_v57 = vmul.f32 %v2422_v42, %v2742_v25  ;;  %v2763_v15 = vmul.f32 %v2742_v25, %v2440_v54  ;;  %v2767_v41 = vmul.f32 %v2742_v25, %v2447_v59 }
 0x1d2   :  { %4370 = vst [vmem:[#allocation37_spill] sm:$0xff] %v2747_v35  ;;  %4371 = vst [vmem:[#allocation38_spill] sm:$0xff] %v2751_v55  ;;  %v2770_v33 = vrot.slane %v730_v0, %v2736_v17  ;;  %v2774_v43 = vmul.f32 %v2437_v52, %v2742_v25  ;;  %v2778_v40 = vmul.f32 %v2445_v58, %v2742_v25  ;;  %v4388_v0 = vld [vmem:[#allocation20_spill] sm:$0xff]  ;;  %v4393_v17 = vld [vmem:[#allocation27_spill] sm:$0xff] }
 0x1d3   :  { %v2782_v42 = vmul.f32 %v2742_v25, %v2460_v6  ;;  %v2786_v54 = vmul.f32 %v2742_v25, %v2467_v11  ;;  %v2790_v59 = vmul.f32 %v2457_v4, %v2742_v25  ;;  %v2794_v52 = vmul.f32 %v2465_v10, %v2742_v25 }
 0x1d4   :  { %4372 = vst [vmem:[#allocation39_spill] sm:$0xff] %v2778_v40  ;;  %v2798_v58 = vmul.f32 %v2742_v25, %v2480_v22  ;;  %v2801_v13 = vadd.f32 %v2770_v33, %v798_v49  ;;  %v750_v6 = vmul.f32 %v2742_v25, %v2487_v27  ;;  %v751_v11 = vmul.f32 %v2477_v20, %v2742_v25 }
 0x1d5   :  { %4373 = vst [vmem:[#allocation40_spill] sm:$0xff] %v2782_v42  ;;  %4374 = vst [vmem:[#allocation41_spill] sm:$0xff] %v2786_v54  ;;  %v752_v4 = vmul.f32 %v2485_v26, %v2742_v25  ;;  %v753_v10 = vmul.f32 %v2742_v25, %v2500_v38  ;;  %v754_v7 = vmul.f32 %v2742_v25, %v2507_v47  ;;  %v4401_v42 = vld [vmem:[#allocation35_spill] sm:$0xff] }
 0x1d6   :  { %4375 = vst [vmem:[#allocation42_spill] sm:$0xff] %v2790_v59  ;;  %4376 = vst [vmem:[#allocation43_spill] sm:$0xff] %v2794_v52  ;;  %v755_v22 = vmul.f32 %v2497_v36, %v2742_v25  ;;  %v756_v32 = vmul.f32 %v2505_v46, %v2742_v25  ;;  %v757_v20 = vmul.f32 %v2742_v25, %v2520_v62  ;;  %v4398_v52 = vld [vmem:[#allocation33_spill] sm:$0xff] }
 0x1d7   :  { %4377 = vst [vmem:[#allocation44_spill] sm:$0xff] %v2798_v58  ;;  %4378 = vst [vmem:[#allocation45_spill] sm:$0xff] %v2801_v13  ;;  %v758_v26 = vmul.f32 %v2742_v25, %v2527_v5  ;;  %v759_v38 = vmul.f32 %v2517_v60, %v2742_v25  ;;  %v760_v47 = vmul.f32 %v2525_v2, %v2742_v25  ;;  %v4394_v13 = vld [vmem:[#allocation29_spill] sm:$0xff]  ;;  %v4397_v58 = vld [vmem:[#allocation31_spill] sm:$0xff] }
 0x1d8   :  { %v761_v36 = vmul.f32 %v2742_v25, %v2540_v21  ;;  %v762_v46 = vmul.f32 %v2742_v25, %v2547_v30  ;;  %v763_v63 = vmul.f32 %v2537_v18, %v2742_v25  ;;  %v764_v62 = vmul.f32 %v2545_v28, %v2742_v25 }
 0x1d9   :  { %v765_v5 = vmul.f32 %v2742_v25, %v2560_v50  ;;  %v766_v60 = vmul.f32 %v2742_v25, %v2567_v61  ;;  %v767_v2 = vmul.f32 %v2557_v48, %v2742_v25  ;;  %v768_v21 = vmul.f32 %v2565_v56, %v2742_v25  ;;  %v4379_v56 = vld [vmem:[#allocation12_spill] sm:$0xff] }
 0x1da   :  { %v769_v30 = vmul.f32 %v2742_v25, %v2580_v16  ;;  %v770_v18 = vmul.f32 %v2742_v25, %v2587_v29  ;;  %v771_v28 = vmul.f32 %v2577_v14, %v2742_v25  ;;  %v772_v50 = vmul.f32 %v2585_v24, %v2742_v25  ;;  %v4380_v16 = vld [vmem:[#allocation13_spill] sm:$0xff]  ;;  %v4383_v24 = vld [vmem:[#allocation14_spill] sm:$0xff] }
 0x1db   :  { %v773_v61 = vmul.f32 %v2742_v25, %v2600_v53  ;;  %v774_v48 = vmul.f32 %v2742_v25, %v2607_v1  ;;  %v775_v9 = vmul.f32 %v4379_v56, %v2742_v25  ;;  %v776_v37 = vmul.f32 %v4380_v16, %v2742_v25  ;;  %v4384_v53 = vld [vmem:[#allocation16_spill] sm:$0xff]  ;;  %v4389_v56 = vld [vmem:[#allocation23_spill] sm:$0xff] }
 0x1dc   :  { %v777_v29 = vmul.f32 %v2742_v25, %v4381_v44  ;;  %v778_v14 = vmul.f32 %v2742_v25, %v4382_v23  ;;  %v779_v39 = vmul.f32 %v4383_v24, %v2742_v25  ;;  %v780_v12 = vmul.f32 %v4384_v53, %v2742_v25  ;;  %v4390_v44 = vld [vmem:[#allocation25_spill] sm:$0xff]  ;;  %v4391_v24 = vld [vmem:[#allocation22_spill] sm:$0xff] }
 0x1dd   :  { %v781_v1 = vmul.f32 %v2742_v25, %v4385_v3  ;;  %v782_v51 = vmul.f32 %v2742_v25, %v4386_v8  ;;  %v783_v19 = vmul.f32 %v4387_v34, %v2742_v25  ;;  %v784_v49 = vmul.f32 %v4388_v0, %v2742_v25  ;;  %v4392_v3 = vld [vmem:[#allocation24_spill] sm:$0xff]  ;;  %v4395_v0 = vld [vmem:[#allocation26_spill] sm:$0xff] }
 0x1de   :  { %v785_v16 = vmul.f32 %v2742_v25, %v4389_v56  ;;  %v786_v23 = vmul.f32 %v2742_v25, %v4390_v44  ;;  %v787_v53 = vmul.f32 %v4391_v24, %v2742_v25  ;;  %v788_v27 = vmul.f32 %v4392_v3, %v2742_v25  ;;  %v4396_v56 = vld [vmem:[#allocation28_spill] sm:$0xff]  ;;  %v4399_v3 = vld [vmem:[#allocation30_spill] sm:$0xff] }
 0x1df   :  { %v789_v8 = vmul.f32 %v2742_v25, %v4393_v17  ;;  %v790_v34 = vmul.f32 %v2742_v25, %v4394_v13  ;;  %v791_v55 = vmul.f32 %v4395_v0, %v2742_v25  ;;  %v792_v35 = vmul.f32 %v4396_v56, %v2742_v25  ;;  %v4400_v17 = vld [vmem:[#allocation32_spill] sm:$0xff]  ;;  %v4402_v0 = vld [vmem:[#allocation34_spill] sm:$0xff] }
 0x1e0   :  { %v793_v44 = vmul.f32 %v2742_v25, %v4397_v58  ;;  %v794_v24 = vmul.f32 %v2742_v25, %v4398_v52  ;;  %v795_v59 = vmul.f32 %v4399_v3, %v2742_v25  ;;  %v796_v54 = vmul.f32 %v4400_v17, %v2742_v25 }
 0x1e1   :  { %v797_v13 = vmul.f32 %v2742_v25, %v4401_v42  ;;  %v799_v40 = vmul.f32 %v4402_v0, %v2742_v25  ;;  %v800_v56 = vmul.f32 %v2725_v45, %v2742_v25  ;;  %v2906_v58 = vadd.f32 %v2770_v33, %v2755_v31  ;;  %v4406_v45 = vld [vmem:[#allocation39_spill] sm:$0xff]  ;;  %v4408_v31 = vld [vmem:[#allocation40_spill] sm:$0xff]  ;;  %v4409_v0 = vld [vmem:[#allocation41_spill] sm:$0xff] }
 0x1e2   :  { %v2910_v52 = vadd.f32 %v2770_v33, %v2759_v57  ;;  %v2914_v3 = vadd.f32 %v2770_v33, %v2763_v15  ;;  %v2918_v42 = vadd.f32 %v2770_v33, %v2767_v41  ;;  %v2922_v17 = vadd.f32 %v2770_v33, %v2774_v43 }
 0x1e3   :  { %v2926_v25 = vadd.f32 %v2770_v33, %v4406_v45  ;;  %v2930_v57 = vadd.f32 %v2770_v33, %v4408_v31  ;;  %v2934_v15 = vadd.f32 %v2770_v33, %v4409_v0  ;;  %v2952_v31 = vadd.f32 %v2770_v33, %v751_v11 }
 0x1e4   :  { %4403 = vst [vmem:[#allocation12_spill] sm:$0xff] %v2914_v3  ;;  %4404 = vst [vmem:[#allocation13_spill] sm:$0xff] %v2918_v42  ;;  %v4410_v3 = vld [vmem:[#allocation42_spill] sm:$0xff]  ;;  %v4412_v42 = vld [vmem:[#allocation43_spill] sm:$0xff]  ;;  %v2955_v0 = vadd.f32 %v2770_v33, %v752_v4  ;;  %v2973_v11 = vadd.f32 %v2770_v33, %v758_v26  ;;  %v2976_v4 = vadd.f32 %v2770_v33, %v759_v38 }
 0x1e5   :  { %4405 = vst [vmem:[#allocation15_spill] sm:$0xff] %v2922_v17  ;;  %4407 = vst [vmem:[#allocation17_spill] sm:$0xff] %v2926_v25  ;;  %v2938_v41 = vadd.f32 %v2770_v33, %v4410_v3  ;;  %v2942_v43 = vadd.f32 %v2770_v33, %v4412_v42  ;;  %v4413_v17 = vld [vmem:[#allocation44_spill] sm:$0xff]  ;;  %v2949_v25 = vadd.f32 %v2770_v33, %v750_v6 }
 0x1e6   :  { %v2946_v45 = vadd.f32 %v2770_v33, %v4413_v17  ;;  %v2958_v3 = vadd.f32 %v2770_v33, %v753_v10  ;;  %v2964_v42 = vadd.f32 %v2770_v33, %v755_v22  ;;  %v2967_v17 = vadd.f32 %v2770_v33, %v756_v32 }
 0x1e7   :  { %4411 = vst [vmem:[#allocation14_spill] sm:$0xff] %v2938_v41  ;;  %v2961_v41 = vadd.f32 %v2770_v33, %v754_v7  ;;  %v2970_v6 = vadd.f32 %v2770_v33, %v757_v20  ;;  %v2979_v10 = vadd.f32 %v2770_v33, %v760_v47  ;;  %v2982_v7 = vadd.f32 %v2770_v33, %v761_v36 }
 0x1e8   :  { %v2985_v22 = vadd.f32 %v2770_v33, %v762_v46  ;;  %v2988_v32 = vadd.f32 %v2770_v33, %v763_v63  ;;  %v2991_v20 = vadd.f32 %v2770_v33, %v764_v62  ;;  %v2994_v26 = vadd.f32 %v2770_v33, %v765_v5 }
 0x1e9   :  { %v2997_v38 = vadd.f32 %v2770_v33, %v766_v60  ;;  %v3000_v47 = vadd.f32 %v2770_v33, %v767_v2  ;;  %v3003_v36 = vadd.f32 %v2770_v33, %v768_v21  ;;  %v3006_v46 = vadd.f32 %v2770_v33, %v769_v30 }
 0x1ea   :  { %v3009_v63 = vadd.f32 %v2770_v33, %v770_v18  ;;  %v3012_v62 = vadd.f32 %v2770_v33, %v771_v28  ;;  %v3015_v5 = vadd.f32 %v2770_v33, %v772_v50  ;;  %v3018_v60 = vadd.f32 %v2770_v33, %v773_v61 }
 0x1eb   :  { %v3021_v2 = vadd.f32 %v2770_v33, %v774_v48  ;;  %v3024_v21 = vadd.f32 %v2770_v33, %v775_v9  ;;  %v3027_v30 = vadd.f32 %v2770_v33, %v776_v37  ;;  %v3030_v18 = vadd.f32 %v2770_v33, %v777_v29 }
 0x1ec   :  { %v3033_v28 = vadd.f32 %v2770_v33, %v778_v14  ;;  %v3036_v50 = vadd.f32 %v2770_v33, %v779_v39  ;;  %v3039_v61 = vadd.f32 %v2770_v33, %v780_v12  ;;  %v3042_v48 = vadd.f32 %v2770_v33, %v781_v1 }
 0x1ed   :  { %v3045_v9 = vadd.f32 %v2770_v33, %v782_v51  ;;  %v3048_v37 = vadd.f32 %v2770_v33, %v783_v19  ;;  %v3051_v29 = vadd.f32 %v2770_v33, %v784_v49  ;;  %v3054_v14 = vadd.f32 %v2770_v33, %v785_v16 }
 0x1ee   :  { %v3057_v39 = vadd.f32 %v2770_v33, %v786_v23  ;;  %v3060_v12 = vadd.f32 %v2770_v33, %v787_v53  ;;  %v3063_v1 = vadd.f32 %v2770_v33, %v788_v27  ;;  %v3066_v51 = vadd.f32 %v2770_v33, %v789_v8 }
 0x1ef   :  { %v3069_v19 = vadd.f32 %v2770_v33, %v790_v34  ;;  %v3072_v49 = vadd.f32 %v2770_v33, %v791_v55  ;;  %v3075_v16 = vadd.f32 %v2770_v33, %v792_v35  ;;  %v3078_v23 = vadd.f32 %v2770_v33, %v793_v44  ;;  %v4427_v44 = vld [vmem:[#allocation37_spill] sm:$0xff] }
 0x1f0   :  { %4414 = vst [vmem:[#allocation16_spill] sm:$0xff] %v3060_v12  ;;  %4415 = vst [vmem:[#allocation19_spill] sm:$0xff] %v3063_v1  ;;  %v3081_v53 = vadd.f32 %v2770_v33, %v794_v24  ;;  %v3084_v27 = vadd.f32 %v2770_v33, %v795_v59  ;;  %v3087_v8 = vadd.f32 %v2770_v33, %v796_v54  ;;  %v4428_v24 = vld [vmem:[#allocation38_spill] sm:$0xff]  ;;  %v873_v59 = vmax.f32 %v2906_v58, 0.0 }
 0x1f1   :  { %4416 = vst [vmem:[#allocation21_spill] sm:$0xff] %v3066_v51  ;;  %4417 = vst [vmem:[#allocation18_spill] sm:$0xff] %v3069_v19  ;;  %v3090_v34 = vadd.f32 %v2770_v33, %v797_v13  ;;  %v3093_v55 = vadd.f32 %v2770_v33, %v799_v40  ;;  %v3096_v35 = vadd.f32 %v2770_v33, %v800_v56  ;;  %v874_v54 = vmax.f32 %v2910_v52, 0.0  ;;  %v4430_v13 = vld [vmem:[#allocation13_spill] sm:$0xff] }
 0x1f2   :  { %4418 = vst [vmem:[#allocation20_spill] sm:$0xff] %v3072_v49  ;;  %4419 = vst [vmem:[#allocation23_spill] sm:$0xff] %v3075_v16  ;;  %v4431_v16 = vld [vmem:[#allocation15_spill] sm:$0xff]  ;;  %v4432_v56 = vld [vmem:[#allocation17_spill] sm:$0xff]  ;;  %v879_v19 = vmax.f32 %v2930_v57, 0.0 }
 0x1f3   :  { %4420 = vst [vmem:[#allocation25_spill] sm:$0xff] %v3078_v23  ;;  %4421 = vst [vmem:[#allocation22_spill] sm:$0xff] %v3081_v53  ;;  %v807_v23 = vadd.f32 %v2770_v33, %v4427_v44  ;;  %v808_v53 = vadd.f32 %v2770_v33, %v4428_v24  ;;  %v877_v40 = vmax.f32 %v4431_v16, 0.0  ;;  %v936_v44 = vpack.c.bf16 %v874_v54, %v873_v59  ;;  %v4433_v24 = vld [vmem:[#allocation14_spill] sm:$0xff] }
 0x1f4   :  { %4422 = vst [vmem:[#allocation24_spill] sm:$0xff] %v3084_v27  ;;  %4423 = vst [vmem:[#allocation27_spill] sm:$0xff] %v3087_v8  ;;  %v4429_v8 = vld [vmem:[#allocation12_spill] sm:$0xff]  ;;  %v880_v33 = vmax.f32 %v2934_v15, 0.0  ;;  %v881_v58 = vmax.f32 %v4433_v24, 0.0  ;;  %v884_v16 = vmax.f32 %v2949_v25, 0.0 }
 0x1f5   :  { %4424 = vst [vmem:[#allocation29_spill] sm:$0xff] %v3090_v34  ;;  %4425 = vst [vmem:[#allocation26_spill] sm:$0xff] %v3093_v55  ;;  %v875_v27 = vmax.f32 %v4429_v8, 0.0  ;;  %v876_v34 = vmax.f32 %v4430_v13, 0.0  ;;  %v871_v55 = vmax.f32 %v807_v23, 0.0  ;;  %v872_v49 = vmax.f32 %v808_v53, 0.0 }
 0x1f6   :  { %4426 = vst [vmem:[#allocation28_spill] sm:$0xff] %v3096_v35  ;;  %v878_v35 = vmax.f32 %v4432_v56, 0.0  ;;  %v882_v8 = vmax.f32 %v2942_v43, 0.0  ;;  %v883_v13 = vmax.f32 %v2946_v45, 0.0  ;;  %v939_v12 = vpack.c.bf16 %v880_v33, %v879_v19 }
 0x1f7   :  { %v937_v51 = vpack.c.bf16 %v876_v34, %v875_v27  ;;  %v935_v1 = vpack.c.bf16 %v872_v49, %v871_v55  ;;  %v885_v23 = vmax.f32 %v2952_v31, 0.0  ;;  %v886_v53 = vmax.f32 %v2955_v0, 0.0 }
 0x1f8   :  { %v938_v52 = vpack.c.bf16 %v878_v35, %v877_v40  ;;  %v3116_v57 = vpack.c.bf16 %v882_v8, %v881_v58  ;;  %v887_v15 = vmax.f32 %v2958_v3, 0.0  ;;  %v888_v27 = vmax.f32 %v2961_v41, 0.0 }
 0x1f9   :  { %2075 = vmatprep.mubr.bf16.mxu1 %v935_v1  ;;  %v889_v49 = vmax.f32 %v2964_v42, 0.0  ;;  %v3121_v43 = vpack.c.bf16 %v884_v16, %v883_v13  ;;  %v3123_v45 = vpack.c.bf16 %v886_v53, %v885_v23  ;;  %v890_v25 = vmax.f32 %v2967_v17, 0.0  ;;  %v4435_v23 = vld [vmem:[#allocation19_spill] sm:$0xff]  ;;  %v4436_v53 = vld [vmem:[#allocation21_spill] sm:$0xff] }
 0x1fa   :  { %2076 = vmatmul.mubr.bf16.vlgmr.msra.gmra.mrb[0].mxu1 %v936_v44  ;;  %v891_v31 = vmax.f32 %v2970_v6, 0.0  ;;  %v3127_v0 = vpack.c.bf16 %v888_v27, %v887_v15  ;;  %v892_v1 = vmax.f32 %v2973_v11, 0.0  ;;  %v893_v3 = vmax.f32 %v2976_v4, 0.0  ;;  %v4437_v27 = vld [vmem:[#allocation18_spill] sm:$0xff] }
 0x1fb   :  { %2079 = vmatprep.mubr.bf16.mxu1 %v937_v51  ;;  %v894_v41 = vmax.f32 %v2979_v10, 0.0  ;;  %v3132_v19 = vpack.c.bf16 %v890_v25, %v889_v49  ;;  %v895_v42 = vmax.f32 %v2982_v7, 0.0  ;;  %v896_v34 = vmax.f32 %v2985_v22, 0.0  ;;  %v4438_v49 = vld [vmem:[#allocation20_spill] sm:$0xff]  ;;  %v4439_v25 = vld [vmem:[#allocation23_spill] sm:$0xff] }
 0x1fc   :  { %v897_v55 = vmax.f32 %v2988_v32, 0.0  ;;  %v3137_v17 = vpack.c.bf16 %v892_v1, %v891_v31  ;;  %v898_v51 = vmax.f32 %v2991_v20, 0.0  ;;  %v899_v11 = vmax.f32 %v2994_v26, 0.0  ;;  %v4440_v1 = vld [vmem:[#allocation25_spill] sm:$0xff] }
 0x1fd   :  { %v3139_v6 = vpack.c.bf16 %v894_v41, %v893_v3  ;;  %v947_v35 = vpack.c.bf16 %v896_v34, %v895_v42  ;;  %v900_v4 = vmax.f32 %v2997_v38, 0.0  ;;  %v901_v10 = vmax.f32 %v3000_v47, 0.0  ;;  %v4441_v3 = vld [vmem:[#allocation22_spill] sm:$0xff]  ;;  %v4442_v41 = vld [vmem:[#allocation24_spill] sm:$0xff] }
 0x1fe   :  { %v902_v59 = vmax.f32 %v3003_v36, 0.0  ;;  %v948_v7 = vpack.c.bf16 %v898_v51, %v897_v55  ;;  %v903_v22 = vmax.f32 %v3006_v46, 0.0  ;;  %v904_v32 = vmax.f32 %v3009_v63, 0.0  ;;  %v4443_v51 = vld [vmem:[#allocation27_spill] sm:$0xff] }
 0x1ff   :  { %v905_v54 = vmax.f32 %v3012_v62, 0.0  ;;  %v949_v40 = vpack.c.bf16 %v900_v4, %v899_v11  ;;  %v906_v20 = vmax.f32 %v3015_v5, 0.0  ;;  %v907_v26 = vmax.f32 %v3018_v60, 0.0  ;;  %v4444_v4 = vld [vmem:[#allocation29_spill] sm:$0xff] }
 0x200   :  { %v950_v56 = vpack.c.bf16 %v902_v59, %v901_v10  ;;  %v951_v44 = vpack.c.bf16 %v904_v32, %v903_v22  ;;  %v908_v38 = vmax.f32 %v3021_v2, 0.0  ;;  %v909_v47 = vmax.f32 %v3024_v21, 0.0  ;;  %v4445_v22 = vld [vmem:[#allocation26_spill] sm:$0xff] }
 0x201   :  { %v910_v36 = vmax.f32 %v3027_v30, 0.0  ;;  %v952_v33 = vpack.c.bf16 %v906_v20, %v905_v54  ;;  %v911_v46 = vmax.f32 %v3030_v18, 0.0  ;;  %v912_v63 = vmax.f32 %v3033_v28, 0.0  ;;  %v4446_v54 = vld [vmem:[#allocation28_spill] sm:$0xff] }
 0x202   :  { %2080 = vmatmul.mubr.bf16.gmra.mrb[4].mxu1 %v938_v52  ;;  %v913_v62 = vmax.f32 %v3036_v50, 0.0  ;;  %v953_v24 = vpack.c.bf16 %v908_v38, %v907_v26  ;;  %v914_v60 = vmax.f32 %v3039_v61, 0.0  ;;  %v915_v58 = vmax.f32 %v3042_v48, 0.0  ;;  %v4434_v50 = vld [vmem:[#allocation16_spill] sm:$0xff]  ;;  %v4447_v38 = vld [vmem:[#allocation45_spill] sm:$0xff] }
 0x203   :  { %2083 = vmatprep.mubr.bf16.mxu1 %v939_v12  ;;  %v954_v5 = vpack.c.bf16 %v910_v36, %v909_v47  ;;  %v955_v2 = vpack.c.bf16 %v912_v63, %v911_v46  ;;  %v916_v21 = vmax.f32 %v3045_v9, 0.0  ;;  %v917_v30 = vmax.f32 %v3048_v37, 0.0 }
 0x204   :  { %v918_v52 = vmax.f32 %v3051_v29, 0.0  ;;  %v956_v8 = vpack.c.bf16 %v914_v60, %v913_v62  ;;  %v919_v18 = vmax.f32 %v3054_v14, 0.0  ;;  %v920_v28 = vmax.f32 %v3057_v39, 0.0 }
 0x205   :  { %v921_v12 = vmax.f32 %v4434_v50, 0.0  ;;  %v957_v13 = vpack.c.bf16 %v916_v21, %v915_v58  ;;  %v922_v61 = vmax.f32 %v4435_v23, 0.0  ;;  %v923_v48 = vmax.f32 %v4436_v53, 0.0 }
 0x206   :  { %v958_v16 = vpack.c.bf16 %v918_v52, %v917_v30  ;;  %v959_v15 = vpack.c.bf16 %v920_v28, %v919_v18  ;;  %v924_v9 = vmax.f32 %v4437_v27, 0.0  ;;  %v925_v37 = vmax.f32 %v4438_v49, 0.0 }
 0x207   :  { %v926_v29 = vmax.f32 %v4439_v25, 0.0  ;;  %v960_v31 = vpack.c.bf16 %v922_v61, %v921_v12  ;;  %v927_v14 = vmax.f32 %v4440_v1, 0.0  ;;  %v928_v39 = vmax.f32 %v4441_v3, 0.0 }
 0x208   :  { %v929_v42 = vmax.f32 %v4442_v41, 0.0  ;;  %v961_v34 = vpack.c.bf16 %v924_v9, %v923_v48  ;;  %v930_v11 = vmax.f32 %v4443_v51, 0.0  ;;  %v931_v10 = vmax.f32 %v4444_v4, 0.0 }
 0x209   :  { %v962_v55 = vpack.c.bf16 %v926_v29, %v925_v37  ;;  %v963_v59 = vpack.c.bf16 %v928_v39, %v927_v14  ;;  %v933_v32 = vmax.f32 %v4445_v22, 0.0  ;;  %v934_v20 = vmax.f32 %v4446_v54, 0.0 }
 0x20a   :  { %2084 = vmatmul.mubr.bf16.gmra.mrb[8].mxu1 %v3116_v57  ;;  %v964_v26 = vpack.c.bf16 %v930_v11, %v929_v42  ;;  %v4448_v47 = vmax.f32 %v4447_v38, 0.0 }
 0x20b   :  { %2087 = vmatprep.mubr.bf16.mxu1 %v3121_v43  ;;  %v966_v46 = vpack.c.bf16 %v934_v20, %v933_v32 }
 0x20c   :  { %v965_v36 = vpack.c.bf16 %v4448_v47, %v931_v10 }
 0x212   :  { %2088 = vmatmul.mubr.bf16.gmra.mrb[12].mxu1 %v3123_v45 }
 0x213   :  { %2091 = vmatprep.mubr.bf16.mxu1 %v3127_v0 }
 0x21a   :  { %2092 = vmatmul.mubr.bf16.gmra.mrb[16].mxu1 %v3132_v19 }
 0x21b   :  { %2095 = vmatprep.mubr.bf16.mxu1 %v3137_v17 }
 0x222   :  { %2096 = vmatmul.mubr.bf16.gmra.mrb[20].mxu1 %v3139_v6 }
 0x223   :  { %2099 = vmatprep.mubr.bf16.mxu1 %v947_v35 }
 0x22a   :  { %2100 = vmatmul.mubr.bf16.gmra.mrb[24].mxu1 %v948_v7 }
 0x22b   :  { %2103 = vmatprep.mubr.bf16.mxu1 %v949_v40 }
 0x232   :  { %2104 = vmatmul.mubr.bf16.gmra.mrb[28].mxu1 %v950_v56 }
 0x233   :  { %2107 = vmatprep.mubr.bf16.mxu1 %v951_v44 }
 0x23a   :  { %2108 = vmatmul.mubr.bf16.gmra.mrb[32].mxu1 %v952_v33 }
 0x23b   :  { %2111 = vmatprep.mubr.bf16.mxu1 %v953_v24 }
 0x242   :  { %2112 = vmatmul.mubr.bf16.gmra.mrb[36].mxu1 %v954_v5 }
 0x243   :  { %2115 = vmatprep.mubr.bf16.mxu1 %v955_v2 }
 0x24a   :  { %2116 = vmatmul.mubr.bf16.gmra.mrb[40].mxu1 %v956_v8 }
 0x24b   :  { %2119 = vmatprep.mubr.bf16.mxu1 %v957_v13 }
 0x252   :  { %2120 = vmatmul.mubr.bf16.gmra.mrb[44].mxu1 %v958_v16 }
 0x253   :  { %2123 = vmatprep.mubr.bf16.mxu1 %v959_v15 }
 0x25a   :  { %2124 = vmatmul.mubr.bf16.gmra.mrb[48].mxu1 %v960_v31 }
 0x25b   :  { %2127 = vmatprep.mubr.bf16.mxu1 %v961_v34 }
 0x262   :  { %2128 = vmatmul.mubr.bf16.gmra.mrb[52].mxu1 %v962_v55 }
 0x263   :  { %2131 = vmatprep.mubr.bf16.mxu1 %v963_v59 }
 0x26a   :  { %2132 = vmatmul.mubr.bf16.gmra.mrb[56].mxu1 %v964_v26 }
 0x26b   :  { %2135 = vmatprep.mubr.bf16.mxu1 %v965_v36 }
 0x272   :  { %2136 = vmatmul.mubr.bf16.gmra.mrb[60].mxu1 %v966_v46 }
 0x2cd   :  { %v3186_v57 = vpop.f32.mrb[0].mxu1 }
 0x2ce   :  { %v3188_v43 = vpop.f32.mrb[1].mxu1  ;;  %v1392_v35 = vmul.f32 %v3186_v57, %v3186_v57 }
 0x2cf   :  { %v3190_v45 = vpop.f32.mrb[2].mxu1  ;;  %v1390_v19 = vmul.f32 %v3188_v43, %v3188_v43 }
 0x2d0   :  { %v3192_v0 = vpop.f32.mrb[3].mxu1  ;;  %v1393_v56 = vmul.f32 %v3190_v45, %v3190_v45 }
 0x2d1   :  { %v1320_v17 = vadd.f32 %v3192_v0, %v3188_v43  ;;  %v1391_v6 = vmul.f32 %v3192_v0, %v3192_v0 }
 0x2d3   :  { %v1321_v7 = vadd.f32 %v3186_v57, %v1320_v17  ;;  %v1454_v40 = vadd.f32 %v1391_v6, %v1390_v19 }
 0x2d5   :  { %v1455_v44 = vadd.f32 %v1454_v40, %v1392_v35  ;;  %v3205_v33 = vpop.f32.mrb[4].mxu1  ;;  %v1322_v63 = vadd.f32 %v3190_v45, %v1321_v7 }
 0x2d6   :  { %v3208_v62 = vpop.f32.mrb[5].mxu1  ;;  %v1396_v8 = vmul.f32 %v3205_v33, %v3205_v33 }
 0x2d7   :  { %v1323_v24 = vadd.f32 %v1322_v63, %v3208_v62  ;;  %v1394_v5 = vmul.f32 %v3208_v62, %v3208_v62  ;;  %v1456_v60 = vadd.f32 %v1455_v44, %v1393_v56  ;;  %v3213_v58 = vpop.f32.mrb[6].mxu1 }
 0x2d8   :  { %v3215_v2 = vpop.f32.mrb[7].mxu1  ;;  %v1397_v50 = vmul.f32 %v3213_v58, %v3213_v58 }
 0x2d9   :  { %v1457_v21 = vadd.f32 %v1456_v60, %v1394_v5  ;;  %v1324_v30 = vadd.f32 %v1323_v24, %v3215_v2  ;;  %v1395_v52 = vmul.f32 %v3215_v2, %v3215_v2 }
 0x2db   :  { %v1325_v18 = vadd.f32 %v3205_v33, %v1324_v30  ;;  %v1458_v28 = vadd.f32 %v1457_v21, %v1395_v52 }
 0x2dd   :  { %v1459_v12 = vadd.f32 %v1458_v28, %v1396_v8  ;;  %v3225_v13 = vpop.f32.mrb[8].mxu1  ;;  %v1326_v16 = vadd.f32 %v3213_v58, %v1325_v18 }
 0x2de   :  { %v3228_v23 = vpop.f32.mrb[9].mxu1  ;;  %v1400_v25 = vmul.f32 %v3225_v13, %v3225_v13 }
 0x2df   :  { %v1327_v61 = vadd.f32 %v1326_v16, %v3228_v23  ;;  %v1398_v53 = vmul.f32 %v3228_v23, %v3228_v23  ;;  %v1460_v48 = vadd.f32 %v1459_v12, %v1397_v50  ;;  %v3233_v15 = vpop.f32.mrb[10].mxu1 }
 0x2e0   :  { %v3235_v27 = vpop.f32.mrb[11].mxu1  ;;  %v1401_v1 = vmul.f32 %v3233_v15, %v3233_v15 }
 0x2e1   :  { %v1461_v9 = vadd.f32 %v1460_v48, %v1398_v53  ;;  %v1328_v49 = vadd.f32 %v1327_v61, %v3235_v27  ;;  %v1399_v37 = vmul.f32 %v3235_v27, %v3235_v27 }
 0x2e3   :  { %v1329_v29 = vadd.f32 %v3225_v13, %v1328_v49  ;;  %v1462_v31 = vadd.f32 %v1461_v9, %v1399_v37 }
 0x2e5   :  { %v1463_v14 = vadd.f32 %v1462_v31, %v1400_v25  ;;  %v3245_v3 = vpop.f32.mrb[12].mxu1  ;;  %v1330_v39 = vadd.f32 %v3233_v15, %v1329_v29 }
 0x2e6   :  { %v3248_v41 = vpop.f32.mrb[13].mxu1  ;;  %v1404_v22 = vmul.f32 %v3245_v3, %v3245_v3 }
 0x2e7   :  { %v1331_v42 = vadd.f32 %v1330_v39, %v3248_v41  ;;  %v1402_v34 = vmul.f32 %v3248_v41, %v3248_v41  ;;  %v1464_v55 = vadd.f32 %v1463_v14, %v1401_v1  ;;  %v3253_v51 = vpop.f32.mrb[14].mxu1 }
 0x2e8   :  { %v3255_v11 = vpop.f32.mrb[15].mxu1  ;;  %v1405_v20 = vmul.f32 %v3253_v51, %v3253_v51 }
 0x2e9   :  { %v1465_v4 = vadd.f32 %v1464_v55, %v1402_v34  ;;  %v1332_v10 = vadd.f32 %v1331_v42, %v3255_v11  ;;  %v1403_v59 = vmul.f32 %v3255_v11, %v3255_v11 }
 0x2eb   :  { %v1333_v32 = vadd.f32 %v3245_v3, %v1332_v10  ;;  %v1466_v54 = vadd.f32 %v1465_v4, %v1403_v59 }
 0x2ed   :  { %v1467_v26 = vadd.f32 %v1466_v54, %v1404_v22  ;;  %v3265_v38 = vpop.f32.mrb[16].mxu1  ;;  %v1334_v47 = vadd.f32 %v3253_v51, %v1333_v32 }
 0x2ee   :  { %v3268_v36 = vpop.f32.mrb[17].mxu1  ;;  %v1408_v44 = vmul.f32 %v3265_v38, %v3265_v38 }
 0x2ef   :  { %v1335_v46 = vadd.f32 %v1334_v47, %v3268_v36  ;;  %v1406_v19 = vmul.f32 %v3268_v36, %v3268_v36  ;;  %v1468_v17 = vadd.f32 %v1467_v26, %v1405_v20  ;;  %v3273_v6 = vpop.f32.mrb[18].mxu1 }
 0x2f0   :  { %v3275_v35 = vpop.f32.mrb[19].mxu1  ;;  %v1409_v5 = vmul.f32 %v3273_v6, %v3273_v6 }
 0x2f1   :  { %v1469_v7 = vadd.f32 %v1468_v17, %v1406_v19  ;;  %v1336_v40 = vadd.f32 %v1335_v46, %v3275_v35  ;;  %v1407_v56 = vmul.f32 %v3275_v35, %v3275_v35 }
 0x2f3   :  { %v1337_v63 = vadd.f32 %v3265_v38, %v1336_v40  ;;  %v1470_v24 = vadd.f32 %v1469_v7, %v1407_v56 }
 0x2f5   :  { %v1471_v60 = vadd.f32 %v1470_v24, %v1408_v44  ;;  %v3285_v21 = vpop.f32.mrb[20].mxu1  ;;  %v1338_v30 = vadd.f32 %v3273_v6, %v1337_v63 }
 0x2f6   :  { %v3288_v52 = vpop.f32.mrb[21].mxu1  ;;  %v1412_v48 = vmul.f32 %v3285_v21, %v3285_v21 }
 0x2f7   :  { %v1339_v8 = vadd.f32 %v1338_v30, %v3288_v52  ;;  %v1410_v18 = vmul.f32 %v3288_v52, %v3288_v52  ;;  %v1472_v28 = vadd.f32 %v1471_v60, %v1409_v5  ;;  %v3293_v50 = vpop.f32.mrb[22].mxu1 }
 0x2f8   :  { %v3295_v12 = vpop.f32.mrb[23].mxu1  ;;  %v1413_v37 = vmul.f32 %v3293_v50, %v3293_v50 }
 0x2f9   :  { %v1473_v16 = vadd.f32 %v1472_v28, %v1410_v18  ;;  %v1340_v61 = vadd.f32 %v1339_v8, %v3295_v12  ;;  %v1411_v53 = vmul.f32 %v3295_v12, %v3295_v12 }
 0x2fb   :  { %v1341_v9 = vadd.f32 %v3285_v21, %v1340_v61  ;;  %v1474_v49 = vadd.f32 %v1473_v16, %v1411_v53 }
 0x2fd   :  { %v1475_v25 = vadd.f32 %v1474_v49, %v1412_v48  ;;  %v3305_v29 = vpop.f32.mrb[24].mxu1  ;;  %v1342_v31 = vadd.f32 %v3293_v50, %v1341_v9 }
 0x2fe   :  { %v3308_v1 = vpop.f32.mrb[25].mxu1  ;;  %v1416_v22 = vmul.f32 %v3305_v29, %v3305_v29 }
 0x2ff   :  { %v1343_v14 = vadd.f32 %v1342_v31, %v3308_v1  ;;  %v1414_v39 = vmul.f32 %v3308_v1, %v3308_v1  ;;  %v1476_v42 = vadd.f32 %v1475_v25, %v1413_v37  ;;  %v3313_v34 = vpop.f32.mrb[26].mxu1 }
 0x300   :  { %v3315_v55 = vpop.f32.mrb[27].mxu1  ;;  %v1417_v20 = vmul.f32 %v3313_v34, %v3313_v34 }
 0x301   :  { %v1477_v4 = vadd.f32 %v1476_v42, %v1414_v39  ;;  %v1344_v10 = vadd.f32 %v1343_v14, %v3315_v55  ;;  %v1415_v59 = vmul.f32 %v3315_v55, %v3315_v55 }
 0x303   :  { %v1345_v32 = vadd.f32 %v3305_v29, %v1344_v10  ;;  %v1478_v54 = vadd.f32 %v1477_v4, %v1415_v59 }
 0x305   :  { %v1479_v26 = vadd.f32 %v1478_v54, %v1416_v22  ;;  %v3325_v47 = vpop.f32.mrb[28].mxu1  ;;  %v1346_v46 = vadd.f32 %v3313_v34, %v1345_v32 }
 0x306   :  { %v3328_v19 = vpop.f32.mrb[29].mxu1  ;;  %v1420_v60 = vmul.f32 %v3325_v47, %v3325_v47 }
 0x307   :  { %v1347_v17 = vadd.f32 %v1346_v46, %v3328_v19  ;;  %v1418_v7 = vmul.f32 %v3328_v19, %v3328_v19  ;;  %v1480_v40 = vadd.f32 %v1479_v26, %v1417_v20  ;;  %v3333_v56 = vpop.f32.mrb[30].mxu1 }
 0x308   :  { %v3335_v44 = vpop.f32.mrb[31].mxu1  ;;  %v1421_v18 = vmul.f32 %v3333_v56, %v3333_v56 }
 0x309   :  { %v1481_v63 = vadd.f32 %v1480_v40, %v1418_v7  ;;  %v1348_v24 = vadd.f32 %v1347_v17, %v3335_v44  ;;  %v1419_v5 = vmul.f32 %v3335_v44, %v3335_v44 }
 0x30b   :  { %v1349_v30 = vadd.f32 %v3325_v47, %v1348_v24  ;;  %v1482_v8 = vadd.f32 %v1481_v63, %v1419_v5 }
 0x30d   :  { %v1483_v28 = vadd.f32 %v1482_v8, %v1420_v60  ;;  %v3345_v16 = vpop.f32.mrb[32].mxu1  ;;  %v1350_v61 = vadd.f32 %v3333_v56, %v1349_v30 }
 0x30e   :  { %v3348_v53 = vpop.f32.mrb[33].mxu1  ;;  %v1424_v42 = vmul.f32 %v3345_v16, %v3345_v16 }
 0x30f   :  { %v1351_v48 = vadd.f32 %v1350_v61, %v3348_v53  ;;  %v1422_v9 = vmul.f32 %v3348_v53, %v3348_v53  ;;  %v1484_v49 = vadd.f32 %v1483_v28, %v1421_v18  ;;  %v3353_v37 = vpop.f32.mrb[34].mxu1 }
 0x310   :  { %v3355_v25 = vpop.f32.mrb[35].mxu1  ;;  %v1425_v59 = vmul.f32 %v3353_v37, %v3353_v37 }
 0x311   :  { %v1485_v31 = vadd.f32 %v1484_v49, %v1422_v9  ;;  %v1352_v14 = vadd.f32 %v1351_v48, %v3355_v25  ;;  %v1423_v39 = vmul.f32 %v3355_v25, %v3355_v25 }
 0x313   :  { %v1353_v4 = vadd.f32 %v3345_v16, %v1352_v14  ;;  %v1486_v10 = vadd.f32 %v1485_v31, %v1423_v39 }
 0x315   :  { %v1487_v22 = vadd.f32 %v1486_v10, %v1424_v42  ;;  %v3365_v32 = vpop.f32.mrb[36].mxu1  ;;  %v1354_v54 = vadd.f32 %v3353_v37, %v1353_v4 }
 0x316   :  { %4449 = vst [vmem:[#allocation31_spill] sm:$0xff] %v3365_v32  ;;  %v3368_v20 = vpop.f32.mrb[37].mxu1  ;;  %v1428_v60 = vmul.f32 %v3365_v32, %v3365_v32 }
 0x317   :  { %v1355_v26 = vadd.f32 %v1354_v54, %v3368_v20  ;;  %v1426_v46 = vmul.f32 %v3368_v20, %v3368_v20  ;;  %v1488_v17 = vadd.f32 %v1487_v22, %v1425_v59  ;;  %v3373_v7 = vpop.f32.mrb[38].mxu1 }
 0x318   :  { %4450 = vst [vmem:[#allocation33_spill] sm:$0xff] %v3373_v7  ;;  %v3375_v40 = vpop.f32.mrb[39].mxu1  ;;  %v1429_v18 = vmul.f32 %v3373_v7, %v3373_v7 }
 0x319   :  { %v1489_v63 = vadd.f32 %v1488_v17, %v1426_v46  ;;  %v1356_v24 = vadd.f32 %v1355_v26, %v3375_v40  ;;  %v1427_v5 = vmul.f32 %v3375_v40, %v3375_v40 }
 0x31b   :  { %v1357_v30 = vadd.f32 %v3365_v32, %v1356_v24  ;;  %v1490_v8 = vadd.f32 %v1489_v63, %v1427_v5 }
 0x31d   :  { %v1491_v28 = vadd.f32 %v1490_v8, %v1428_v60  ;;  %v3385_v61 = vpop.f32.mrb[40].mxu1  ;;  %v1358_v48 = vadd.f32 %v3373_v7, %v1357_v30 }
 0x31e   :  { %4451 = vst [vmem:[#allocation30_spill] sm:$0xff] %v3385_v61  ;;  %v3388_v9 = vpop.f32.mrb[41].mxu1  ;;  %v1432_v22 = vmul.f32 %v3385_v61, %v3385_v61 }
 0x31f   :  { %4452 = vst [vmem:[#allocation32_spill] sm:$0xff] %v3388_v9  ;;  %v1359_v49 = vadd.f32 %v1358_v48, %v3388_v9  ;;  %v1430_v31 = vmul.f32 %v3388_v9, %v3388_v9  ;;  %v1492_v14 = vadd.f32 %v1491_v28, %v1429_v18  ;;  %v3393_v39 = vpop.f32.mrb[42].mxu1 }
 0x320   :  { %4453 = vst [vmem:[#allocation35_spill] sm:$0xff] %v3393_v39  ;;  %v3395_v42 = vpop.f32.mrb[43].mxu1  ;;  %v1433_v46 = vmul.f32 %v3393_v39, %v3393_v39 }
 0x321   :  { %4454 = vst [vmem:[#allocation34_spill] sm:$0xff] %v3395_v42  ;;  %v1493_v4 = vadd.f32 %v1492_v14, %v1430_v31  ;;  %v1360_v10 = vadd.f32 %v1359_v49, %v3395_v42  ;;  %v1431_v59 = vmul.f32 %v3395_v42, %v3395_v42 }
 0x323   :  { %v1361_v54 = vadd.f32 %v3385_v61, %v1360_v10  ;;  %v1494_v26 = vadd.f32 %v1493_v4, %v1431_v59 }
 0x325   :  { %v1495_v17 = vadd.f32 %v1494_v26, %v1432_v22  ;;  %v3405_v63 = vpop.f32.mrb[44].mxu1  ;;  %v1362_v24 = vadd.f32 %v3393_v39, %v1361_v54 }
 0x326   :  { %4455 = vst [vmem:[#allocation39_spill] sm:$0xff] %v3405_v63  ;;  %v3408_v5 = vpop.f32.mrb[45].mxu1  ;;  %v1436_v14 = vmul.f32 %v3405_v63, %v3405_v63 }
 0x327   :  { %4456 = vst [vmem:[#allocation40_spill] sm:$0xff] %v3408_v5  ;;  %v1363_v60 = vadd.f32 %v1362_v24, %v3408_v5  ;;  %v1434_v30 = vmul.f32 %v3408_v5, %v3408_v5  ;;  %v1496_v8 = vadd.f32 %v1495_v17, %v1433_v46  ;;  %v3413_v18 = vpop.f32.mrb[46].mxu1 }
 0x328   :  { %4457 = vst [vmem:[#allocation41_spill] sm:$0xff] %v3413_v18  ;;  %v3415_v28 = vpop.f32.mrb[47].mxu1  ;;  %v1437_v59 = vmul.f32 %v3413_v18, %v3413_v18 }
 0x329   :  { %4458 = vst [vmem:[#allocation42_spill] sm:$0xff] %v3415_v28  ;;  %v1497_v48 = vadd.f32 %v1496_v8, %v1434_v30  ;;  %v1364_v49 = vadd.f32 %v1363_v60, %v3415_v28  ;;  %v1435_v31 = vmul.f32 %v3415_v28, %v3415_v28 }
 0x32b   :  { %v1365_v4 = vadd.f32 %v3405_v63, %v1364_v49  ;;  %v1498_v10 = vadd.f32 %v1497_v48, %v1435_v31 }
 0x32d   :  { %v1499_v22 = vadd.f32 %v1498_v10, %v1436_v14  ;;  %v3425_v54 = vpop.f32.mrb[48].mxu1  ;;  %v1366_v26 = vadd.f32 %v3413_v18, %v1365_v4 }
 0x32e   :  { %4459 = vst [vmem:[#allocation43_spill] sm:$0xff] %v3425_v54  ;;  %v3428_v46 = vpop.f32.mrb[49].mxu1  ;;  %v1440_v14 = vmul.f32 %v3425_v54, %v3425_v54 }
 0x32f   :  { %4460 = vst [vmem:[#allocation44_spill] sm:$0xff] %v3428_v46  ;;  %v1367_v17 = vadd.f32 %v1366_v26, %v3428_v46  ;;  %v1438_v24 = vmul.f32 %v3428_v46, %v3428_v46  ;;  %v1500_v60 = vadd.f32 %v1499_v22, %v1437_v59  ;;  %v3433_v30 = vpop.f32.mrb[50].mxu1 }
 0x330   :  { %4461 = vst [vmem:[#allocation37_spill] sm:$0xff] %v3433_v30  ;;  %v3435_v8 = vpop.f32.mrb[51].mxu1  ;;  %v1441_v26 = vmul.f32 %v3433_v30, %v3433_v30 }
 0x331   :  { %4462 = vst [vmem:[#allocation38_spill] sm:$0xff] %v3435_v8  ;;  %v1501_v48 = vadd.f32 %v1500_v60, %v1438_v24  ;;  %v1368_v49 = vadd.f32 %v1367_v17, %v3435_v8  ;;  %v1439_v31 = vmul.f32 %v3435_v8, %v3435_v8 }
 0x333   :  { %v1369_v4 = vadd.f32 %v3425_v54, %v1368_v49  ;;  %v1502_v10 = vadd.f32 %v1501_v48, %v1439_v31 }
 0x335   :  { %v1503_v59 = vadd.f32 %v1502_v10, %v1440_v14  ;;  %v3445_v22 = vpop.f32.mrb[52].mxu1  ;;  %v1370_v46 = vadd.f32 %v3433_v30, %v1369_v4 }
 0x336   :  { %4463 = vst [vmem:[#allocation12_spill] sm:$0xff] %v3445_v22  ;;  %v3448_v24 = vpop.f32.mrb[53].mxu1  ;;  %v1444_v4 = vmul.f32 %v3445_v22, %v3445_v22 }
 0x337   :  { %4464 = vst [vmem:[#allocation13_spill] sm:$0xff] %v3448_v24  ;;  %v1371_v17 = vadd.f32 %v1370_v46, %v3448_v24  ;;  %v1442_v60 = vmul.f32 %v3448_v24, %v3448_v24  ;;  %v1504_v8 = vadd.f32 %v1503_v59, %v1441_v26  ;;  %v3453_v18 = vpop.f32.mrb[54].mxu1 }
 0x338   :  { %4465 = vst [vmem:[#allocation15_spill] sm:$0xff] %v3453_v18  ;;  %v3455_v49 = vpop.f32.mrb[55].mxu1  ;;  %v1445_v24 = vmul.f32 %v3453_v18, %v3453_v18 }
 0x339   :  { %4466 = vst [vmem:[#allocation17_spill] sm:$0xff] %v3455_v49  ;;  %v1505_v48 = vadd.f32 %v1504_v8, %v1442_v60  ;;  %v1372_v31 = vadd.f32 %v1371_v17, %v3455_v49  ;;  %v1443_v14 = vmul.f32 %v3455_v49, %v3455_v49 }
 0x33b   :  { %v1373_v10 = vadd.f32 %v3445_v22, %v1372_v31  ;;  %v1506_v46 = vadd.f32 %v1505_v48, %v1443_v14 }
 0x33d   :  { %v1507_v26 = vadd.f32 %v1506_v46, %v1444_v4  ;;  %v3465_v59 = vpop.f32.mrb[56].mxu1  ;;  %v1374_v30 = vadd.f32 %v3453_v18, %v1373_v10 }
 0x33e   :  { %4467 = vst [vmem:[#allocation14_spill] sm:$0xff] %v3465_v59  ;;  %v3468_v8 = vpop.f32.mrb[57].mxu1  ;;  %v1448_v10 = vmul.f32 %v3465_v59, %v3465_v59 }
 0x33f   :  { %4468 = vst [vmem:[#allocation16_spill] sm:$0xff] %v3468_v8  ;;  %v1375_v17 = vadd.f32 %v1374_v30, %v3468_v8  ;;  %v1446_v60 = vmul.f32 %v3468_v8, %v3468_v8  ;;  %v1508_v49 = vadd.f32 %v1507_v26, %v1445_v24  ;;  %v3473_v54 = vpop.f32.mrb[58].mxu1 }
 0x340   :  { %4469 = vst [vmem:[#allocation19_spill] sm:$0xff] %v3473_v54  ;;  %v3475_v31 = vpop.f32.mrb[59].mxu1  ;;  %v1449_v8 = vmul.f32 %v3473_v54, %v3473_v54 }
 0x341   :  { %4470 = vst [vmem:[#allocation21_spill] sm:$0xff] %v3475_v31  ;;  %v1509_v48 = vadd.f32 %v1508_v49, %v1446_v60  ;;  %v1376_v14 = vadd.f32 %v1375_v17, %v3475_v31  ;;  %v1447_v4 = vmul.f32 %v3475_v31, %v3475_v31 }
 0x343   :  { %v1377_v46 = vadd.f32 %v3465_v59, %v1376_v14  ;;  %v1510_v30 = vadd.f32 %v1509_v48, %v1447_v4 }
 0x345   :  { %v1511_v24 = vadd.f32 %v1510_v30, %v1448_v10  ;;  %v3485_v26 = vpop.f32.mrb[60].mxu1  ;;  %v1378_v18 = vadd.f32 %v3473_v54, %v1377_v46 }
 0x346   :  { %4471 = vst [vmem:[#allocation18_spill] sm:$0xff] %v3485_v26  ;;  %v3488_v49 = vpop.f32.mrb[61].mxu1  ;;  %v1452_v10 = vmul.f32 %v3485_v26, %v3485_v26 }
 0x347   :  { %4472 = vst [vmem:[#allocation20_spill] sm:$0xff] %v3488_v49  ;;  %v1379_v17 = vadd.f32 %v1378_v18, %v3488_v49  ;;  %v1450_v60 = vmul.f32 %v3488_v49, %v3488_v49  ;;  %v1512_v31 = vadd.f32 %v1511_v24, %v1449_v8  ;;  %v3493_v22 = vpop.f32.mrb[62].mxu1 }
 0x348   :  { %v1308_v14 = vpop.f32.mrb[63].mxu1  ;;  %v1453_v54 = vmul.f32 %v3493_v22, %v3493_v22 }
 0x349   :  { %v1513_v48 = vadd.f32 %v1512_v31, %v1450_v60  ;;  %v1380_v4 = vadd.f32 %v1379_v17, %v1308_v14  ;;  %v1451_v59 = vmul.f32 %v1308_v14, %v1308_v14 }
 0x34b   :  { %v1381_v30 = vadd.f32 %v3485_v26, %v1380_v4  ;;  %v1514_v46 = vadd.f32 %v1513_v48, %v1451_v59 }
 0x34d   :  { %v1382_v18 = vadd.f32 %v3493_v22, %v1381_v30  ;;  %v1515_v63 = vadd.f32 %v1514_v46, %v1452_v10 }
 0x34f   :  { %v1383_v49 = vrot.slane %v1382_v18, 4  ;;  %v1516_v8 = vadd.f32 %v1515_v63, %v1453_v54  ;;  %v1526_v63 = vld [vmem:[%s4291_s5] sm:$0x1]  ;;  %s2332_s5 = smov [#allocation8]  }
 0x351   :  { %v1384_v24 = vadd.f32 %v1383_v49, %v1382_v18  ;;  %v1517_v28 = vrot.slane %v1516_v8, 4  ;;  %v2167_v18 = vld [vmem:[#allocation2 + $0x1e8] sm:$0xff] }
 0x353   :  { %v1385_v5 = vrot.slane %v1384_v24, 2  ;;  %v1518_v31 = vadd.f32 %v1517_v28, %v1516_v8 }
 0x355   :  { %v1386_v17 = vadd.f32 %v1385_v5, %v1384_v24  ;;  %v1519_v60 = vrot.slane %v1518_v31, 2  ;;  %v1530_v5 = vld [vmem:[%s4292_s6] sm:$0x1]  ;;  %s1870_s6 = sshll.u32 %s2332_s5, 4  ;;  %s1871_s6 = int_to_ptr.vmem [resolvable:$true] %s1870_s6 }
 0x356   :  { %s2297_s21 = scalar_lea.vmem %s1871_s6, 8192  ;;  %p2302_p11 = scmp.lt.s32.totalorder %s1871_s6, %s1871_s6 }
 0x357   :  { %v1387_v39 = vrot.slane %v1386_v17, 1  ;;  %v1520_v61 = vadd.f32 %v1519_v60, %v1518_v31  ;;  %v4476_v60 = vld [vmem:[#allocation32_spill] sm:$0xff]  ;;  %p2298_p10 = scmp.ne.s32.totalorder %s1871_s6, %s2297_s21  ;;  %p2303_p12 = scmp.lt.s32.totalorder %s2297_s21, %s2297_s21 }
 0x359   :  { %v1388_v42 = vadd.f32 %v1387_v39, %v1386_v17  ;;  %v1521_v9 = vrot.slane %v1520_v61, 1  ;;  %v4473_v39 = vld [vmem:[#allocation36_spill] sm:$0xff]  ;;  %v4475_v17 = vld [vmem:[#allocation33_spill] sm:$0xff]  ;;  %p2304_p13 = por %p2303_p12, %p2302_p11 }
 0x35b   :  { %v1389_v4 = vmul.f32 0.001953125, %v1388_v42  ;;  %v1522_v59 = vadd.f32 %v1521_v9, %v1520_v61  ;;  %p2305_p0 = pnand %p2304_p13, %p2298_p10 }
 0x35d   :  { %v1523_v48 = vmul.f32 0.001953125, %v1522_v59  ;;  %v1524_v26 = vmul.f32 %v1389_v4, %v1389_v4  ;;  %v4478_v59 = vld [vmem:[#allocation30_spill] sm:$0xff] }
 0x35f   :  { %v1525_v7 = vsub.f32 %v1523_v48, %v1524_v26  ;;  %v4479_v48 = vld [vmem:[#allocation35_spill] sm:$0xff] }
 0x361   :  { %v1527_v32 = vadd.f32 1e-05, %v1525_v7 }
 0x363   :  { %2165 = vrsqrt.f32 %v1527_v32 }
 0x36d   :  { %v2166_v54 = vpop.eup %2165 }
 0x36e   :  { %v1529_v49 = vmul.f32 %v2166_v54, %v1526_v63  ;;  %v4480_v54 = vld [vmem:[#allocation40_spill] sm:$0xff] }
 0x370   :  { %v1531_v28 = vmul.f32 %v1529_v49, %v1389_v4  ;;  %v3508_v10 = vrot.slane %v1529_v49, %v4473_v39  ;;  %v4477_v4 = vld [vmem:[#allocation34_spill] sm:$0xff] }
 0x372   :  { %v1532_v61 = vsub.f32 %v1530_v5, %v1531_v28  ;;  %v1600_v9 = vmul.f32 %v3508_v10, %v1308_v14  ;;  %v3513_v32 = vmul.f32 %v3508_v10, %v3188_v43  ;;  %v3517_v7 = vmul.f32 %v3508_v10, %v3192_v0  ;;  %v4481_v5 = vld [vmem:[#allocation42_spill] sm:$0xff] }
 0x373   :  { %v3521_v42 = vmul.f32 %v3186_v57, %v3508_v10  ;;  %v3525_v26 = vmul.f32 %v3190_v45, %v3508_v10  ;;  %v3529_v30 = vmul.f32 %v3508_v10, %v3208_v62  ;;  %v3533_v43 = vmul.f32 %v3508_v10, %v3215_v2 }
 0x374   :  { %v3536_v14 = vrot.slane %v1532_v61, %v4473_v39  ;;  %v3540_v0 = vmul.f32 %v3205_v33, %v3508_v10  ;;  %v3544_v57 = vmul.f32 %v3213_v58, %v3508_v10  ;;  %v3548_v45 = vmul.f32 %v3508_v10, %v3228_v23  ;;  %v4482_v39 = vld [vmem:[#allocation39_spill] sm:$0xff] }
 0x375   :  { %v3552_v62 = vmul.f32 %v3508_v10, %v3235_v27  ;;  %v3556_v2 = vmul.f32 %v3225_v13, %v3508_v10  ;;  %v3560_v33 = vmul.f32 %v3233_v15, %v3508_v10  ;;  %v3564_v58 = vmul.f32 %v3508_v10, %v3248_v41 }
 0x376   :  { %v1670_v46 = vadd.f32 %v3536_v14, %v1600_v9  ;;  %v3569_v23 = vmul.f32 %v3508_v10, %v3255_v11  ;;  %v3573_v27 = vmul.f32 %v3245_v3, %v3508_v10  ;;  %v3577_v13 = vmul.f32 %v3253_v51, %v3508_v10  ;;  %v4483_v9 = vld [vmem:[#allocation41_spill] sm:$0xff] }
 0x377   :  { %v3581_v15 = vmul.f32 %v3508_v10, %v3268_v36  ;;  %v3585_v41 = vmul.f32 %v3508_v10, %v3275_v35  ;;  %v3589_v11 = vmul.f32 %v3265_v38, %v3508_v10  ;;  %v3593_v3 = vmul.f32 %v3273_v6, %v3508_v10 }
 0x378   :  { %v1734_v8 = vadd.f32 %v2167_v18, %v1670_v46  ;;  %v3597_v51 = vmul.f32 %v3508_v10, %v3288_v52  ;;  %v3601_v36 = vmul.f32 %v3508_v10, %v3295_v12  ;;  %v3605_v35 = vmul.f32 %v3285_v21, %v3508_v10  ;;  %v4484_v18 = vld [vmem:[#allocation44_spill] sm:$0xff] }
 0x379   :  { %v3609_v38 = vmul.f32 %v3293_v50, %v3508_v10  ;;  %v3613_v6 = vmul.f32 %v3508_v10, %v3308_v1  ;;  %v3617_v52 = vmul.f32 %v3508_v10, %v3315_v55  ;;  %v3621_v12 = vmul.f32 %v3305_v29, %v3508_v10 }
 0x37a   :  { %v1798_v24 = vmax.f32 %v1734_v8, 0.0  ;;  %v3625_v21 = vmul.f32 %v3313_v34, %v3508_v10  ;;  %v3629_v50 = vmul.f32 %v3508_v10, %v3328_v19  ;;  %v3633_v1 = vmul.f32 %v3508_v10, %v3335_v44 }
 0x37b   :  { %v3637_v55 = vmul.f32 %v3325_v47, %v3508_v10  ;;  %v3641_v29 = vmul.f32 %v3333_v56, %v3508_v10  ;;  %v3645_v34 = vmul.f32 %v3508_v10, %v3348_v53  ;;  %v3649_v19 = vmul.f32 %v3508_v10, %v3355_v25  ;;  %v4474_v25 = vld [vmem:[#allocation31_spill] sm:$0xff] }
 0x37c   :  { %1862 = vst [vmem:[#allocation8 + $0x1e8] sm:$0xff] %v1798_v24  ;;  %v3653_v44 = vmul.f32 %v3345_v16, %v3508_v10  ;;  %v3657_v47 = vmul.f32 %v3353_v37, %v3508_v10  ;;  %v3661_v56 = vmul.f32 %v3508_v10, %v3368_v20  ;;  %v3665_v53 = vmul.f32 %v3508_v10, %v3375_v40  ;;  %v4485_v24 = vld [vmem:[#allocation38_spill] sm:$0xff] }
 0x37d   :  { %v3669_v31 = vmul.f32 %v4474_v25, %v3508_v10  ;;  %v3673_v16 = vmul.f32 %v4475_v17, %v3508_v10  ;;  %v3677_v37 = vmul.f32 %v3508_v10, %v4476_v60  ;;  %v3681_v20 = vmul.f32 %v3508_v10, %v4477_v4  ;;  %v4486_v17 = vld [vmem:[#allocation43_spill] sm:$0xff]  ;;  %v4488_v4 = vld [vmem:[#allocation37_spill] sm:$0xff] }
 0x37e   :  { %v3685_v40 = vmul.f32 %v4478_v59, %v3508_v10  ;;  %v3689_v63 = vmul.f32 %v4479_v48, %v3508_v10  ;;  %v3693_v49 = vmul.f32 %v3508_v10, %v4480_v54  ;;  %v3697_v28 = vmul.f32 %v3508_v10, %v4481_v5  ;;  %v4490_v48 = vld [vmem:[#allocation13_spill] sm:$0xff] }
 0x37f   :  { %v3701_v61 = vmul.f32 %v4482_v39, %v3508_v10  ;;  %v3705_v46 = vmul.f32 %v4483_v9, %v3508_v10  ;;  %v3709_v8 = vmul.f32 %v3508_v10, %v4484_v18  ;;  %v3713_v25 = vmul.f32 %v3508_v10, %v4485_v24  ;;  %v4492_v5 = vld [vmem:[#allocation17_spill] sm:$0xff]  ;;  %v4494_v9 = vld [vmem:[#allocation12_spill] sm:$0xff]  ;;  %v4496_v24 = vld [vmem:[#allocation15_spill] sm:$0xff] }
 0x380   :  { %v3717_v60 = vmul.f32 %v4486_v17, %v3508_v10  ;;  %v3721_v59 = vmul.f32 %v4488_v4, %v3508_v10  ;;  %v3725_v54 = vmul.f32 %v3508_v10, %v4490_v48  ;;  %v3729_v39 = vmul.f32 %v3508_v10, %v4492_v5 }
 0x381   :  { %v3733_v18 = vmul.f32 %v4494_v9, %v3508_v10  ;;  %v3737_v17 = vmul.f32 %v4496_v24, %v3508_v10 }
 0x382   :  { %4487 = vst [vmem:[#allocation23_spill] sm:$0xff] %v3717_v60  ;;  %4489 = vst [vmem:[#allocation25_spill] sm:$0xff] %v3721_v59  ;;  %v4498_v60 = vld [vmem:[#allocation16_spill] sm:$0xff]  ;;  %v4499_v59 = vld [vmem:[#allocation21_spill] sm:$0xff] }
 0x383   :  { %4491 = vst [vmem:[#allocation22_spill] sm:$0xff] %v3725_v54  ;;  %4493 = vst [vmem:[#allocation24_spill] sm:$0xff] %v3729_v39  ;;  %v3741_v4 = vmul.f32 %v3508_v10, %v4498_v60  ;;  %v3745_v48 = vmul.f32 %v3508_v10, %v4499_v59  ;;  %v4500_v54 = vld [vmem:[#allocation14_spill] sm:$0xff]  ;;  %v4501_v39 = vld [vmem:[#allocation19_spill] sm:$0xff]  ;;  %v3765_v59 = vmul.f32 %v3493_v22, %v3508_v10 }
 0x384   :  { %4495 = vst [vmem:[#allocation27_spill] sm:$0xff] %v3733_v18  ;;  %4497 = vst [vmem:[#allocation29_spill] sm:$0xff] %v3737_v17  ;;  %v3749_v5 = vmul.f32 %v4500_v54, %v3508_v10  ;;  %v3753_v9 = vmul.f32 %v4501_v39, %v3508_v10  ;;  %v4502_v18 = vld [vmem:[#allocation20_spill] sm:$0xff]  ;;  %v4503_v17 = vld [vmem:[#allocation18_spill] sm:$0xff]  ;;  %v3769_v54 = vadd.f32 %v3536_v14, %v3513_v32 }
 0x385   :  { %v3757_v24 = vmul.f32 %v3508_v10, %v4502_v18  ;;  %v3761_v60 = vmul.f32 %v4503_v17, %v3508_v10  ;;  %v3773_v39 = vadd.f32 %v3536_v14, %v3517_v7  ;;  %v3777_v18 = vadd.f32 %v3536_v14, %v3521_v42 }
 0x386   :  { %v3781_v17 = vadd.f32 %v3536_v14, %v3525_v26  ;;  %v3785_v22 = vadd.f32 %v3536_v14, %v3529_v30  ;;  %v3789_v10 = vadd.f32 %v3536_v14, %v3533_v43  ;;  %v3793_v32 = vadd.f32 %v3536_v14, %v3540_v0 }
 0x387   :  { %v3797_v7 = vadd.f32 %v3536_v14, %v3544_v57  ;;  %v3801_v42 = vadd.f32 %v3536_v14, %v3548_v45  ;;  %v3805_v26 = vadd.f32 %v3536_v14, %v3552_v62  ;;  %v3809_v30 = vadd.f32 %v3536_v14, %v3556_v2 }
 0x388   :  { %v3813_v43 = vadd.f32 %v3536_v14, %v3560_v33  ;;  %v3817_v0 = vadd.f32 %v3536_v14, %v3564_v58  ;;  %v3821_v57 = vadd.f32 %v3536_v14, %v3569_v23  ;;  %v3825_v45 = vadd.f32 %v3536_v14, %v3573_v27 }
 0x389   :  { %v3829_v62 = vadd.f32 %v3536_v14, %v3577_v13  ;;  %v3833_v2 = vadd.f32 %v3536_v14, %v3581_v15  ;;  %v3837_v33 = vadd.f32 %v3536_v14, %v3585_v41  ;;  %v3841_v58 = vadd.f32 %v3536_v14, %v3589_v11 }
 0x38a   :  { %v3845_v23 = vadd.f32 %v3536_v14, %v3593_v3  ;;  %v3849_v27 = vadd.f32 %v3536_v14, %v3597_v51  ;;  %v3853_v13 = vadd.f32 %v3536_v14, %v3601_v36  ;;  %v3857_v15 = vadd.f32 %v3536_v14, %v3605_v35 }
 0x38b   :  { %v3861_v41 = vadd.f32 %v3536_v14, %v3609_v38  ;;  %v3865_v11 = vadd.f32 %v3536_v14, %v3613_v6  ;;  %v3869_v3 = vadd.f32 %v3536_v14, %v3617_v52  ;;  %v3873_v51 = vadd.f32 %v3536_v14, %v3621_v12 }
 0x38c   :  { %v3877_v36 = vadd.f32 %v3536_v14, %v3625_v21  ;;  %v3881_v35 = vadd.f32 %v3536_v14, %v3629_v50  ;;  %v3885_v38 = vadd.f32 %v3536_v14, %v3633_v1  ;;  %v3889_v6 = vadd.f32 %v3536_v14, %v3637_v55 }
 0x38d   :  { %v3893_v52 = vadd.f32 %v3536_v14, %v3641_v29  ;;  %v3897_v12 = vadd.f32 %v3536_v14, %v3645_v34  ;;  %v3901_v21 = vadd.f32 %v3536_v14, %v3649_v19  ;;  %v3905_v50 = vadd.f32 %v3536_v14, %v3653_v44 }
 0x38e   :  { %v3909_v1 = vadd.f32 %v3536_v14, %v3657_v47  ;;  %v3913_v55 = vadd.f32 %v3536_v14, %v3661_v56  ;;  %v3917_v29 = vadd.f32 %v3536_v14, %v3665_v53  ;;  %v3921_v34 = vadd.f32 %v3536_v14, %v3669_v31 }
 0x38f   :  { %v3925_v19 = vadd.f32 %v3536_v14, %v3673_v16  ;;  %v3929_v44 = vadd.f32 %v3536_v14, %v3677_v37  ;;  %v3933_v47 = vadd.f32 %v3536_v14, %v3681_v20  ;;  %v3937_v56 = vadd.f32 %v3536_v14, %v3685_v40 }
 0x390   :  { %v3941_v53 = vadd.f32 %v3536_v14, %v3689_v63  ;;  %v3945_v31 = vadd.f32 %v3536_v14, %v3693_v49  ;;  %v3949_v16 = vadd.f32 %v3536_v14, %v3697_v28  ;;  %v3953_v37 = vadd.f32 %v3536_v14, %v3701_v61  ;;  %v4509_v49 = vld [vmem:[#allocation23_spill] sm:$0xff] }
 0x391   :  { %v3957_v20 = vadd.f32 %v3536_v14, %v3705_v46  ;;  %v3961_v40 = vadd.f32 %v3536_v14, %v3709_v8  ;;  %v3965_v63 = vadd.f32 %v3536_v14, %v3713_v25  ;;  %v3969_v28 = vadd.f32 %v3536_v14, %v4509_v49 }
 0x392   :  { %4504 = vst [vmem:[#allocation26_spill] sm:$0xff] %v3949_v16  ;;  %4505 = vst [vmem:[#allocation28_spill] sm:$0xff] %v3953_v37  ;;  %v4510_v16 = vld [vmem:[#allocation25_spill] sm:$0xff]  ;;  %v4511_v37 = vld [vmem:[#allocation22_spill] sm:$0xff] }
 0x393   :  { %4506 = vst [vmem:[#allocation45_spill] sm:$0xff] %v3957_v20  ;;  %4507 = vst [vmem:[#allocation36_spill] sm:$0xff] %v3961_v40  ;;  %v3973_v61 = vadd.f32 %v3536_v14, %v4510_v16  ;;  %v3977_v46 = vadd.f32 %v3536_v14, %v4511_v37  ;;  %v4512_v20 = vld [vmem:[#allocation24_spill] sm:$0xff]  ;;  %v4513_v40 = vld [vmem:[#allocation27_spill] sm:$0xff]  ;;  %v3993_v16 = vadd.f32 %v3536_v14, %v3741_v4 }
 0x394   :  { %4508 = vst [vmem:[#allocation31_spill] sm:$0xff] %v3965_v63  ;;  %v3981_v8 = vadd.f32 %v3536_v14, %v4512_v20  ;;  %v3985_v25 = vadd.f32 %v3536_v14, %v4513_v40  ;;  %v4514_v63 = vld [vmem:[#allocation29_spill] sm:$0xff]  ;;  %v3997_v37 = vadd.f32 %v3536_v14, %v3745_v48  ;;  %v4001_v20 = vadd.f32 %v3536_v14, %v3749_v5 }
 0x395   :  { %v3989_v49 = vadd.f32 %v3536_v14, %v4514_v63  ;;  %v4005_v40 = vadd.f32 %v3536_v14, %v3753_v9  ;;  %v4009_v63 = vadd.f32 %v3536_v14, %v3757_v24  ;;  %v4013_v4 = vadd.f32 %v3536_v14, %v3761_v60 }
 0x396   :  { %4515 = vst [vmem:[#allocation33_spill] sm:$0xff] %v3997_v37  ;;  %4516 = vst [vmem:[#allocation32_spill] sm:$0xff] %v4001_v20  ;;  %v4017_v48 = vadd.f32 %v3536_v14, %v3765_v59  ;;  %v2168_v37 = vld [vmem:[#allocation2] sm:$0xff]  ;;  %v2169_v20 = vld [vmem:[#allocation2 + $0x8] sm:$0xff] }
 0x397   :  { %4517 = vst [vmem:[#allocation34_spill] sm:$0xff] %v4005_v40  ;;  %4518 = vst [vmem:[#allocation30_spill] sm:$0xff] %v4009_v63  ;;  %v4020_v5 = vadd.f32 %v2168_v37, %v3769_v54  ;;  %v4023_v9 = vadd.f32 %v2169_v20, %v3773_v39  ;;  %v2170_v40 = vld [vmem:[#allocation2 + $0x10] sm:$0xff]  ;;  %v2171_v63 = vld [vmem:[#allocation2 + $0x18] sm:$0xff] }
 0x398   :  { %4519 = vst [vmem:[#allocation35_spill] sm:$0xff] %v4013_v4  ;;  %v4026_v24 = vadd.f32 %v2170_v40, %v3777_v18  ;;  %v4029_v60 = vadd.f32 %v2171_v63, %v3781_v17  ;;  %v2172_v4 = vld [vmem:[#allocation2 + $0x20] sm:$0xff]  ;;  %v2173_v59 = vld [vmem:[#allocation2 + $0x28] sm:$0xff]  ;;  %v2174_v37 = vld [vmem:[#allocation2 + $0x30] sm:$0xff] }
 0x399   :  { %v4032_v14 = vadd.f32 %v2172_v4, %v3785_v22  ;;  %v4035_v54 = vadd.f32 %v2173_v59, %v3789_v10  ;;  %v4038_v39 = vadd.f32 %v2174_v37, %v3793_v32  ;;  %v2175_v20 = vld [vmem:[#allocation2 + $0x38] sm:$0xff]  ;;  %v2176_v40 = vld [vmem:[#allocation2 + $0x40] sm:$0xff]  ;;  %v2177_v63 = vld [vmem:[#allocation2 + $0x48] sm:$0xff] }
 0x39a   :  { %v4041_v18 = vadd.f32 %v2175_v20, %v3797_v7  ;;  %v4044_v17 = vadd.f32 %v2176_v40, %v3801_v42  ;;  %v4047_v22 = vadd.f32 %v2177_v63, %v3805_v26  ;;  %v2178_v4 = vld [vmem:[#allocation2 + $0x50] sm:$0xff]  ;;  %v2179_v59 = vld [vmem:[#allocation2 + $0x58] sm:$0xff]  ;;  %v2180_v37 = vld [vmem:[#allocation2 + $0x60] sm:$0xff] }
 0x39b   :  { %v4050_v10 = vadd.f32 %v2178_v4, %v3809_v30  ;;  %v4053_v32 = vadd.f32 %v2179_v59, %v3813_v43  ;;  %v4056_v7 = vadd.f32 %v2180_v37, %v3817_v0  ;;  %v2181_v20 = vld [vmem:[#allocation2 + $0x68] sm:$0xff]  ;;  %v2182_v40 = vld [vmem:[#allocation2 + $0x70] sm:$0xff]  ;;  %v2183_v63 = vld [vmem:[#allocation2 + $0x78] sm:$0xff] }
 0x39c   :  { %v4059_v42 = vadd.f32 %v2181_v20, %v3821_v57  ;;  %v4062_v26 = vadd.f32 %v2182_v40, %v3825_v45  ;;  %v4065_v30 = vadd.f32 %v2183_v63, %v3829_v62  ;;  %v2184_v4 = vld [vmem:[#allocation2 + $0x80] sm:$0xff]  ;;  %v2185_v59 = vld [vmem:[#allocation2 + $0x88] sm:$0xff]  ;;  %v2186_v37 = vld [vmem:[#allocation2 + $0x90] sm:$0xff] }
 0x39d   :  { %v4068_v43 = vadd.f32 %v2184_v4, %v3833_v2  ;;  %v4071_v0 = vadd.f32 %v2185_v59, %v3837_v33  ;;  %v4074_v57 = vadd.f32 %v2186_v37, %v3841_v58  ;;  %v2187_v20 = vld [vmem:[#allocation2 + $0x98] sm:$0xff]  ;;  %v2188_v40 = vld [vmem:[#allocation2 + $0xa0] sm:$0xff]  ;;  %v2189_v63 = vld [vmem:[#allocation2 + $0xa8] sm:$0xff] }
 0x39e   :  { %v4077_v45 = vadd.f32 %v2187_v20, %v3845_v23  ;;  %v4080_v62 = vadd.f32 %v2188_v40, %v3849_v27  ;;  %v4083_v2 = vadd.f32 %v2189_v63, %v3853_v13  ;;  %v2190_v4 = vld [vmem:[#allocation2 + $0xb0] sm:$0xff]  ;;  %v2191_v59 = vld [vmem:[#allocation2 + $0xb8] sm:$0xff]  ;;  %v2192_v37 = vld [vmem:[#allocation2 + $0xc0] sm:$0xff] }
 0x39f   :  { %v4086_v33 = vadd.f32 %v2190_v4, %v3857_v15  ;;  %v4089_v58 = vadd.f32 %v2191_v59, %v3861_v41  ;;  %v4092_v23 = vadd.f32 %v2192_v37, %v3865_v11  ;;  %v2193_v20 = vld [vmem:[#allocation2 + $0xc8] sm:$0xff]  ;;  %v2194_v40 = vld [vmem:[#allocation2 + $0xd0] sm:$0xff]  ;;  %v2195_v63 = vld [vmem:[#allocation2 + $0xd8] sm:$0xff] }
 0x3a0   :  { %v4095_v27 = vadd.f32 %v2193_v20, %v3869_v3  ;;  %v4098_v13 = vadd.f32 %v2194_v40, %v3873_v51  ;;  %v4101_v15 = vadd.f32 %v2195_v63, %v3877_v36  ;;  %v2196_v4 = vld [vmem:[#allocation2 + $0xe0] sm:$0xff]  ;;  %v2197_v59 = vld [vmem:[#allocation2 + $0xe8] sm:$0xff]  ;;  %v2198_v37 = vld [vmem:[#allocation2 + $0xf0] sm:$0xff] }
 0x3a1   :  { %v4104_v41 = vadd.f32 %v2196_v4, %v3881_v35  ;;  %v4107_v11 = vadd.f32 %v2197_v59, %v3885_v38  ;;  %v4110_v3 = vadd.f32 %v2198_v37, %v3889_v6  ;;  %v2199_v20 = vld [vmem:[#allocation2 + $0xf8] sm:$0xff]  ;;  %v2200_v40 = vld [vmem:[#allocation2 + $0x100] sm:$0xff]  ;;  %v2201_v63 = vld [vmem:[#allocation2 + $0x108] sm:$0xff] }
 0x3a2   :  { %v4113_v51 = vadd.f32 %v2199_v20, %v3893_v52  ;;  %v4116_v36 = vadd.f32 %v2200_v40, %v3897_v12  ;;  %v4119_v35 = vadd.f32 %v2201_v63, %v3901_v21  ;;  %v2202_v4 = vld [vmem:[#allocation2 + $0x110] sm:$0xff]  ;;  %v2203_v59 = vld [vmem:[#allocation2 + $0x118] sm:$0xff]  ;;  %v2204_v37 = vld [vmem:[#allocation2 + $0x120] sm:$0xff] }
 0x3a3   :  { %v4122_v38 = vadd.f32 %v2202_v4, %v3905_v50  ;;  %v4125_v6 = vadd.f32 %v2203_v59, %v3909_v1  ;;  %v4128_v52 = vadd.f32 %v2204_v37, %v3913_v55  ;;  %v2205_v20 = vld [vmem:[#allocation2 + $0x128] sm:$0xff]  ;;  %v2206_v40 = vld [vmem:[#allocation2 + $0x130] sm:$0xff]  ;;  %v2207_v63 = vld [vmem:[#allocation2 + $0x138] sm:$0xff] }
 0x3a4   :  { %v4131_v12 = vadd.f32 %v2205_v20, %v3917_v29  ;;  %v4134_v21 = vadd.f32 %v2206_v40, %v3921_v34  ;;  %v4137_v50 = vadd.f32 %v2207_v63, %v3925_v19  ;;  %v2208_v4 = vld [vmem:[#allocation2 + $0x140] sm:$0xff]  ;;  %v2209_v59 = vld [vmem:[#allocation2 + $0x148] sm:$0xff]  ;;  %v2210_v37 = vld [vmem:[#allocation2 + $0x150] sm:$0xff] }
 0x3a5   :  { %v4140_v1 = vadd.f32 %v2208_v4, %v3929_v44  ;;  %v4143_v55 = vadd.f32 %v2209_v59, %v3933_v47  ;;  %v4146_v29 = vadd.f32 %v2210_v37, %v3937_v56  ;;  %v2211_v20 = vld [vmem:[#allocation2 + $0x158] sm:$0xff]  ;;  %v2212_v40 = vld [vmem:[#allocation2 + $0x160] sm:$0xff]  ;;  %v2213_v63 = vld [vmem:[#allocation2 + $0x168] sm:$0xff] }
 0x3a6   :  { %4520 = vst [vmem:[#allocation40_spill] sm:$0xff] %v4137_v50  ;;  %v4149_v34 = vadd.f32 %v2211_v20, %v3941_v53  ;;  %v4152_v19 = vadd.f32 %v2212_v40, %v3945_v31  ;;  %v4525_v50 = vld [vmem:[#allocation26_spill] sm:$0xff]  ;;  %v2215_v59 = vld [vmem:[#allocation2 + $0x178] sm:$0xff]  ;;  %v2216_v37 = vld [vmem:[#allocation2 + $0x180] sm:$0xff] }
 0x3a7   :  { %4521 = vst [vmem:[#allocation42_spill] sm:$0xff] %v4140_v1  ;;  %4522 = vst [vmem:[#allocation39_spill] sm:$0xff] %v4143_v55  ;;  %v4155_v44 = vadd.f32 %v2213_v63, %v4525_v50  ;;  %v2214_v4 = vld [vmem:[#allocation2 + $0x170] sm:$0xff]  ;;  %v4526_v1 = vld [vmem:[#allocation28_spill] sm:$0xff] }
 0x3a8   :  { %4523 = vst [vmem:[#allocation41_spill] sm:$0xff] %v4146_v29  ;;  %4524 = vst [vmem:[#allocation44_spill] sm:$0xff] %v4149_v34  ;;  %v4158_v47 = vadd.f32 %v2214_v4, %v4526_v1  ;;  %v4527_v55 = vld [vmem:[#allocation45_spill] sm:$0xff]  ;;  %v4528_v29 = vld [vmem:[#allocation36_spill] sm:$0xff] }
 0x3a9   :  { %v4161_v56 = vadd.f32 %v2215_v59, %v4527_v55  ;;  %v4164_v53 = vadd.f32 %v2216_v37, %v4528_v29  ;;  %v2217_v20 = vld [vmem:[#allocation2 + $0x188] sm:$0xff]  ;;  %v4529_v34 = vld [vmem:[#allocation31_spill] sm:$0xff]  ;;  %v2218_v40 = vld [vmem:[#allocation2 + $0x190] sm:$0xff] }
 0x3aa   :  { %v4167_v31 = vadd.f32 %v2217_v20, %v4529_v34  ;;  %v4170_v50 = vadd.f32 %v2218_v40, %v3969_v28  ;;  %v2219_v63 = vld [vmem:[#allocation2 + $0x198] sm:$0xff]  ;;  %v2220_v4 = vld [vmem:[#allocation2 + $0x1a0] sm:$0xff]  ;;  %v2221_v59 = vld [vmem:[#allocation2 + $0x1a8] sm:$0xff] }
 0x3ab   :  { %v4173_v1 = vadd.f32 %v2219_v63, %v3973_v61  ;;  %v4176_v55 = vadd.f32 %v2220_v4, %v3977_v46  ;;  %v4179_v29 = vadd.f32 %v2221_v59, %v3981_v8  ;;  %v2222_v37 = vld [vmem:[#allocation2 + $0x1b0] sm:$0xff]  ;;  %v2223_v20 = vld [vmem:[#allocation2 + $0x1b8] sm:$0xff]  ;;  %v2224_v40 = vld [vmem:[#allocation2 + $0x1c0] sm:$0xff] }
 0x3ac   :  { %v4182_v34 = vadd.f32 %v2222_v37, %v3985_v25  ;;  %v4185_v28 = vadd.f32 %v2223_v20, %v3989_v49  ;;  %v4188_v61 = vadd.f32 %v2224_v40, %v3993_v16  ;;  %v2225_v63 = vld [vmem:[#allocation2 + $0x1c8] sm:$0xff]  ;;  %v2226_v4 = vld [vmem:[#allocation2 + $0x1d0] sm:$0xff]  ;;  %v2227_v59 = vld [vmem:[#allocation2 + $0x1d8] sm:$0xff] }
 0x3ad   :  { %4530 = vst [vmem:[#allocation38_spill] sm:$0xff] %v4173_v1  ;;  %4531 = vst [vmem:[#allocation43_spill] sm:$0xff] %v4176_v55  ;;  %v4535_v1 = vld [vmem:[#allocation33_spill] sm:$0xff]  ;;  %v4536_v55 = vld [vmem:[#allocation32_spill] sm:$0xff] }
 0x3ae   :  { %4532 = vst [vmem:[#allocation37_spill] sm:$0xff] %v4179_v29  ;;  %4533 = vst [vmem:[#allocation13_spill] sm:$0xff] %v4182_v34  ;;  %v4191_v46 = vadd.f32 %v2225_v63, %v4535_v1  ;;  %v4194_v8 = vadd.f32 %v2226_v4, %v4536_v55  ;;  %v4537_v29 = vld [vmem:[#allocation34_spill] sm:$0xff]  ;;  %v2228_v37 = vld [vmem:[#allocation2 + $0x1e0] sm:$0xff]  ;;  %v1737_v63 = vmax.f32 %v4020_v5, 0.0  ;;  %v1738_v55 = vmax.f32 %v4023_v9, 0.0 }
 0x3af   :  { %4534 = vst [vmem:[#allocation17_spill] sm:$0xff] %v4185_v28  ;;  %v4197_v25 = vadd.f32 %v2227_v59, %v4537_v29  ;;  %v4538_v34 = vld [vmem:[#allocation30_spill] sm:$0xff]  ;;  %v4539_v28 = vld [vmem:[#allocation35_spill] sm:$0xff]  ;;  %v1739_v4 = vmax.f32 %v4026_v24, 0.0  ;;  %v1740_v29 = vmax.f32 %v4029_v60, 0.0  ;;  %v1741_v59 = vmax.f32 %v4032_v14, 0.0 }
 0x3b0   :  { %v4200_v49 = vadd.f32 %v2228_v37, %v4538_v34  ;;  %v2229_v20 = vld [vmem:[#allocation2 + $0x1f0] sm:$0xff]  ;;  %v2230_v40 = vld [vmem:[#allocation2 + $0x1f8] sm:$0xff]  ;;  %v1742_v34 = vmax.f32 %v4035_v54, 0.0  ;;  %v1743_v37 = vmax.f32 %v4038_v39, 0.0  ;;  %1801 = vst [vmem:[#allocation8] sm:$0xff] %v1737_v63  ;;  %v1747_v5 = vmax.f32 %v4050_v10, 0.0 }
 0x3b1   :  { %v4203_v16 = vadd.f32 %v2229_v20, %v4539_v28  ;;  %v4206_v1 = vadd.f32 %v2230_v40, %v4017_v48  ;;  %v1744_v28 = vmax.f32 %v4041_v18, 0.0  ;;  %v1745_v20 = vmax.f32 %v4044_v17, 0.0  ;;  %1802 = vst [vmem:[#allocation8 + $0x8] sm:$0xff] %v1738_v55  ;;  %1803 = vst [vmem:[#allocation8 + $0x10] sm:$0xff] %v1739_v4  ;;  %v4544_v40 = vld [vmem:[#allocation44_spill] sm:$0xff] }
 0x3b2   :  { %v1746_v48 = vmax.f32 %v4047_v22, 0.0  ;;  %v1748_v9 = vmax.f32 %v4053_v32, 0.0  ;;  %v1749_v24 = vmax.f32 %v4056_v7, 0.0  ;;  %1804 = vst [vmem:[#allocation8 + $0x18] sm:$0xff] %v1740_v29  ;;  %1805 = vst [vmem:[#allocation8 + $0x20] sm:$0xff] %v1741_v59  ;;  %v1750_v60 = vmax.f32 %v4059_v42, 0.0 }
 0x3b3   :  { %v1751_v14 = vmax.f32 %v4062_v26, 0.0  ;;  %v1752_v54 = vmax.f32 %v4065_v30, 0.0  ;;  %v1753_v39 = vmax.f32 %v4068_v43, 0.0  ;;  %1806 = vst [vmem:[#allocation8 + $0x28] sm:$0xff] %v1742_v34  ;;  %1807 = vst [vmem:[#allocation8 + $0x30] sm:$0xff] %v1743_v37  ;;  %v1754_v18 = vmax.f32 %v4071_v0, 0.0 }
 0x3b4   :  { %1808 = vst [vmem:[#allocation8 + $0x38] sm:$0xff] %v1744_v28  ;;  %1809 = vst [vmem:[#allocation8 + $0x40] sm:$0xff] %v1745_v20  ;;  %v1755_v17 = vmax.f32 %v4074_v57, 0.0  ;;  %v1756_v22 = vmax.f32 %v4077_v45, 0.0  ;;  %v1757_v10 = vmax.f32 %v4080_v62, 0.0  ;;  %v1758_v32 = vmax.f32 %v4083_v2, 0.0 }
 0x3b5   :  { %1810 = vst [vmem:[#allocation8 + $0x48] sm:$0xff] %v1746_v48  ;;  %1811 = vst [vmem:[#allocation8 + $0x50] sm:$0xff] %v1747_v5  ;;  %v1759_v7 = vmax.f32 %v4086_v33, 0.0  ;;  %v1760_v42 = vmax.f32 %v4089_v58, 0.0  ;;  %v1761_v26 = vmax.f32 %v4092_v23, 0.0  ;;  %v1762_v30 = vmax.f32 %v4095_v27, 0.0 }
 0x3b6   :  { %1812 = vst [vmem:[#allocation8 + $0x58] sm:$0xff] %v1748_v9  ;;  %1813 = vst [vmem:[#allocation8 + $0x60] sm:$0xff] %v1749_v24  ;;  %v1763_v43 = vmax.f32 %v4098_v13, 0.0  ;;  %v1764_v0 = vmax.f32 %v4101_v15, 0.0  ;;  %v1765_v57 = vmax.f32 %v4104_v41, 0.0  ;;  %v1766_v45 = vmax.f32 %v4107_v11, 0.0 }
 0x3b7   :  { %1814 = vst [vmem:[#allocation8 + $0x68] sm:$0xff] %v1750_v60  ;;  %1815 = vst [vmem:[#allocation8 + $0x70] sm:$0xff] %v1751_v14  ;;  %v1767_v62 = vmax.f32 %v4110_v3, 0.0  ;;  %v1768_v2 = vmax.f32 %v4113_v51, 0.0  ;;  %v1769_v33 = vmax.f32 %v4116_v36, 0.0  ;;  %v1770_v58 = vmax.f32 %v4119_v35, 0.0 }
 0x3b8   :  { %1816 = vst [vmem:[#allocation8 + $0x78] sm:$0xff] %v1752_v54  ;;  %1817 = vst [vmem:[#allocation8 + $0x80] sm:$0xff] %v1753_v39  ;;  %v1771_v23 = vmax.f32 %v4122_v38, 0.0  ;;  %v1772_v27 = vmax.f32 %v4125_v6, 0.0  ;;  %v1773_v13 = vmax.f32 %v4128_v52, 0.0  ;;  %v1774_v15 = vmax.f32 %v4131_v12, 0.0 }
 0x3b9   :  { %1818 = vst [vmem:[#allocation8 + $0x88] sm:$0xff] %v1754_v18  ;;  %1819 = vst [vmem:[#allocation8 + $0x90] sm:$0xff] %v1755_v17  ;;  %v1775_v41 = vmax.f32 %v4134_v21, 0.0  ;;  %v4540_v11 = vld [vmem:[#allocation40_spill] sm:$0xff]  ;;  %v4541_v51 = vld [vmem:[#allocation42_spill] sm:$0xff]  ;;  %v1780_v63 = vmax.f32 %v4544_v40, 0.0 }
 0x3ba   :  { %1820 = vst [vmem:[#allocation8 + $0x98] sm:$0xff] %v1756_v22  ;;  %1821 = vst [vmem:[#allocation8 + $0xa0] sm:$0xff] %v1757_v10  ;;  %v1776_v3 = vmax.f32 %v4540_v11, 0.0  ;;  %v1777_v36 = vmax.f32 %v4541_v51, 0.0  ;;  %v4542_v35 = vld [vmem:[#allocation39_spill] sm:$0xff]  ;;  %v4543_v6 = vld [vmem:[#allocation41_spill] sm:$0xff] }
 0x3bb   :  { %1822 = vst [vmem:[#allocation8 + $0xa8] sm:$0xff] %v1758_v32  ;;  %1823 = vst [vmem:[#allocation8 + $0xb0] sm:$0xff] %v1759_v7  ;;  %v1778_v38 = vmax.f32 %v4542_v35, 0.0  ;;  %v1779_v52 = vmax.f32 %v4543_v6, 0.0  ;;  %v1781_v55 = vmax.f32 %v4152_v19, 0.0  ;;  %v1782_v12 = vmax.f32 %v4155_v44, 0.0 }
 0x3bc   :  { %1824 = vst [vmem:[#allocation8 + $0xb8] sm:$0xff] %v1760_v42  ;;  %1825 = vst [vmem:[#allocation8 + $0xc0] sm:$0xff] %v1761_v26  ;;  %v1783_v21 = vmax.f32 %v4158_v47, 0.0  ;;  %v1784_v4 = vmax.f32 %v4161_v56, 0.0  ;;  %v1785_v29 = vmax.f32 %v4164_v53, 0.0  ;;  %v1786_v59 = vmax.f32 %v4167_v31, 0.0 }
 0x3bd   :  { %1826 = vst [vmem:[#allocation8 + $0xc8] sm:$0xff] %v1762_v30  ;;  %1827 = vst [vmem:[#allocation8 + $0xd0] sm:$0xff] %v1763_v43  ;;  %v1787_v19 = vmax.f32 %v4170_v50, 0.0  ;;  %v4545_v34 = vld [vmem:[#allocation38_spill] sm:$0xff]  ;;  %v4546_v28 = vld [vmem:[#allocation43_spill] sm:$0xff]  ;;  %v1793_v31 = vmax.f32 %v4188_v61, 0.0 }
 0x3be   :  { %1828 = vst [vmem:[#allocation8 + $0xd8] sm:$0xff] %v1764_v0  ;;  %1829 = vst [vmem:[#allocation8 + $0xe0] sm:$0xff] %v1765_v57  ;;  %v1788_v37 = vmax.f32 %v4545_v34, 0.0  ;;  %v1789_v20 = vmax.f32 %v4546_v28, 0.0  ;;  %v4547_v44 = vld [vmem:[#allocation37_spill] sm:$0xff]  ;;  %v1794_v50 = vmax.f32 %v4191_v46, 0.0 }
 0x3bf   :  { %1830 = vst [vmem:[#allocation8 + $0xe8] sm:$0xff] %v1766_v45  ;;  %1831 = vst [vmem:[#allocation8 + $0xf0] sm:$0xff] %v1767_v62  ;;  %v1790_v47 = vmax.f32 %v4547_v44, 0.0  ;;  %v4548_v56 = vld [vmem:[#allocation13_spill] sm:$0xff]  ;;  %v1795_v9 = vmax.f32 %v4194_v8, 0.0  ;;  %v1796_v24 = vmax.f32 %v4197_v25, 0.0 }
 0x3c0   :  { %1832 = vst [vmem:[#allocation8 + $0xf8] sm:$0xff] %v1768_v2  ;;  %1833 = vst [vmem:[#allocation8 + $0x100] sm:$0xff] %v1769_v33  ;;  %v1791_v53 = vmax.f32 %v4548_v56, 0.0  ;;  %v4549_v48 = vld [vmem:[#allocation17_spill] sm:$0xff]  ;;  %v1797_v60 = vmax.f32 %v4200_v49, 0.0  ;;  %v1799_v14 = vmax.f32 %v4203_v16, 0.0 }
 0x3c1   :  { %1834 = vst [vmem:[#allocation8 + $0x108] sm:$0xff] %v1770_v58  ;;  %1835 = vst [vmem:[#allocation8 + $0x110] sm:$0xff] %v1771_v23  ;;  %v1792_v5 = vmax.f32 %v4549_v48, 0.0  ;;  %v1800_v61 = vmax.f32 %v4206_v1, 0.0 }
 0x3c2   :  { %1836 = vst [vmem:[#allocation8 + $0x118] sm:$0xff] %v1772_v27  ;;  %1837 = vst [vmem:[#allocation8 + $0x120] sm:$0xff] %v1773_v13 }
 0x3c3   :  { %1838 = vst [vmem:[#allocation8 + $0x128] sm:$0xff] %v1774_v15  ;;  %1839 = vst [vmem:[#allocation8 + $0x130] sm:$0xff] %v1775_v41 }
 0x3c4   :  { %1840 = vst [vmem:[#allocation8 + $0x138] sm:$0xff] %v1776_v3  ;;  %1841 = vst [vmem:[#allocation8 + $0x140] sm:$0xff] %v1777_v36 }
 0x3c5   :  { %1842 = vst [vmem:[#allocation8 + $0x148] sm:$0xff] %v1778_v38  ;;  %1843 = vst [vmem:[#allocation8 + $0x150] sm:$0xff] %v1779_v52 }
 0x3c6   :  { %1844 = vst [vmem:[#allocation8 + $0x158] sm:$0xff] %v1780_v63  ;;  %1845 = vst [vmem:[#allocation8 + $0x160] sm:$0xff] %v1781_v55 }
 0x3c7   :  { %1846 = vst [vmem:[#allocation8 + $0x168] sm:$0xff] %v1782_v12  ;;  %1847 = vst [vmem:[#allocation8 + $0x170] sm:$0xff] %v1783_v21 }
 0x3c8   :  { %1848 = vst [vmem:[#allocation8 + $0x178] sm:$0xff] %v1784_v4  ;;  %1849 = vst [vmem:[#allocation8 + $0x180] sm:$0xff] %v1785_v29 }
 0x3c9   :  { %1850 = vst [vmem:[#allocation8 + $0x188] sm:$0xff] %v1786_v59  ;;  %1851 = vst [vmem:[#allocation8 + $0x190] sm:$0xff] %v1787_v19 }
 0x3ca   :  { %1852 = vst [vmem:[#allocation8 + $0x198] sm:$0xff] %v1788_v37  ;;  %1853 = vst [vmem:[#allocation8 + $0x1a0] sm:$0xff] %v1789_v20 }
 0x3cb   :  { %1854 = vst [vmem:[#allocation8 + $0x1a8] sm:$0xff] %v1790_v47  ;;  %1855 = vst [vmem:[#allocation8 + $0x1b0] sm:$0xff] %v1791_v53 }
 0x3cc   :  { %1856 = vst [vmem:[#allocation8 + $0x1b8] sm:$0xff] %v1792_v5  ;;  %1857 = vst [vmem:[#allocation8 + $0x1c0] sm:$0xff] %v1793_v31 }
 0x3cd   :  { %1858 = vst [vmem:[#allocation8 + $0x1c8] sm:$0xff] %v1794_v50  ;;  %1859 = vst [vmem:[#allocation8 + $0x1d0] sm:$0xff] %v1795_v9 }
 0x3ce   :  { %1860 = vst [vmem:[#allocation8 + $0x1d8] sm:$0xff] %v1796_v24  ;;  %1861 = vst [vmem:[#allocation8 + $0x1e0] sm:$0xff] %v1797_v60 }
 0x3cf   :  { %1863 = vst [vmem:[#allocation8 + $0x1f0] sm:$0xff] %v1799_v14  ;;  %1864 = vst [vmem:[#allocation8 + $0x1f8] sm:$0xff] %v1800_v61 }
 0x3d0   :  { %2308 = shalt.err (!%p2305_p0)
}
 0x3d1   :  { %s2309_s24 = scalar_lea.hbm %s4293_s7, 8192 }
 0x3d2   :  { %p2310_p1 = scmp.ne.s32.totalorder %s4293_s7, %s2309_s24  ;;  %p2313_p2 = scmp.lt.u32.totalorder %s2309_s24, %s4293_s7 }
 0x3d4   :  { %p2315_p3 = pnand %p2313_p2, %p2310_p1 }
 0x3d6   :  { %2318 = shalt.err (!%p2315_p3)
}
 0x3d7   :  { %1876 = dma.vmem_to_hbm [thread:$0]  %s1871_s6, 8192, %s4293_s7, [#allocation4], %s2329_s1, %s2329_s1, %s2330_s25  }
 0x3d8   :  { %2323 = dma.done.wait [#allocation4], 8192  }
 0x3d9   :  { %2324 = vsyncadd [#allocation4], 4294959104 }
 0x3da   :  { %1880 = vsyncpa [#allocation3], 1 }
 0x3db   :  { %1881 = vsyncpa [#allocation6], 1 }
 0x3dc   :  { %1882 = vsyncpa [#allocation4], 1 }

</bundles_post_ra>
